<compile_context>
chip_gen: v7x
topology: tpu7x:2x2x1
jax: 0.10.0
libtpu: 0.0.40
codegen_flags: <defaults>
</compile_context>

<pallas_src>
import math
from functools import partial

import jax
import jax.numpy as jnp
import numpy as np
from jax.experimental import pallas as pl
from jax.experimental.pallas import tpu as pltpu

# ---------------- configuration (small synthetic sizes) ----------------
B = 2          # batch
L_Q = 16       # query length
L_KV = 8       # key/value length
C = 32         # embedding dim
NUM_HEADS = 4
HEAD_DIM = C // NUM_HEADS
MLP_RATIO = 4.0
HIDDEN = int(C * MLP_RATIO)
SCALE = HEAD_DIM ** (-0.5)
LN_EPS = 1e-5


def _layer_norm(x, w, b):
    # PyTorch nn.LayerNorm: biased variance over last dim, eps inside sqrt.
    mu = jnp.mean(x, axis=-1, keepdims=True)
    var = jnp.mean((x - mu) ** 2, axis=-1, keepdims=True)
    return (x - mu) * jax.lax.rsqrt(var + LN_EPS) * w + b


def _gelu_exact(x):
    # nn.GELU() default = exact erf formulation.
    return 0.5 * x * (1.0 + jax.lax.erf(x * (1.0 / math.sqrt(2.0))))


# ---------------------------- Pallas kernel ----------------------------
def _cab_kernel(q_ref, kv_ref, qape_ref, kape_ref, apos_ref,
                wq_ref, wkv_ref, wproj_ref, wfc1_ref, wfc2_ref,
                vecs_ref, bfc1_ref, out_ref, *, bp, lq, lkv):
    H = NUM_HEADS
    D = HEAD_DIM

    q_in = q_ref[...]                      # (bp*lq, C)
    kv_in = kv_ref[...]                    # (bp*lkv, C)
    vecs = vecs_ref[...]                   # (8, C) packed small vectors

    ln1q_w, ln1q_b = vecs[0:1], vecs[1:2]
    ln1kv_w, ln1kv_b = vecs[2:3], vecs[3:4]
    ln2_w, ln2_b = vecs[4:5], vecs[5:6]
    bproj, bfc2 = vecs[6:7], vecs[7:8]

    # --- norm1 on the whole (bp*L, C) slab ---
    qn = _layer_norm(q_in, ln1q_w, ln1q_b)
    kvn = _layer_norm(kv_in, ln1kv_w, ln1kv_b)

    # --- replicate normed activations per head along the MAJOR axis.
    #     (sublane-aligned copies only; no cross-lane relayout)        ---
    qn_g = jnp.stack([qn[b * lq:(b + 1) * lq]
                      for b in range(bp) for _ in range(H)], axis=0)    # (g, lq, C)
    kvn_g = jnp.stack([kvn[b * lkv:(b + 1) * lkv]
                       for b in range(bp) for _ in range(H)], axis=0)   # (g, lkv, C)

    # --- batched per-(batch, head) projections (single MXU stream each) ---
    qh = jnp.einsum('glc,gcd->gld', qn_g, wq_ref[...],
                    preferred_element_type=jnp.float32) + qape_ref[...]   # (g, lq, D)
    kvh = jnp.einsum('glc,gcd->gld', kvn_g, wkv_ref[...],
                     preferred_element_type=jnp.float32)                  # (g, lkv, 2D)
    kh = kvh[:, :, :D] + kape_ref[...]
    vh = kvh[:, :, D:]

    # --- attention, batched over (batch*head) ---
    s = jnp.einsum('gqd,gkd->gqk', qh, kh,
                   preferred_element_type=jnp.float32) * SCALE + apos_ref[...]
    s = s - jnp.max(s, axis=-1, keepdims=True)
    p = jnp.exp(s)
    p = p * pl.reciprocal(jnp.sum(p, axis=-1, keepdims=True), approx=True)
    ctx = jnp.einsum('gqk,gkd->gqd', p, vh,
                     preferred_element_type=jnp.float32)                  # (g, lq, D)

    # --- output projection fused with the head merge:
    #     x @ Wproj == sum_h ctx_h @ Wproj[h*D:(h+1)*D, :]             ---
    proj_g = jnp.einsum('gqd,gdc->gqc', ctx, wproj_ref[...],
                        preferred_element_type=jnp.float32)               # (g, lq, C)
    rows = []
    for b in range(bp):
        acc = proj_g[b * H]
        for h in range(1, H):
            acc = acc + proj_g[b * H + h]
        rows.append(acc)
    attn_out = rows[0] if bp == 1 else jnp.concatenate(rows, axis=0)      # (bp*lq, C)
    q1 = q_in + attn_out + bproj           # residual; proj bias folded in

    # --- MLP branch ---
    xn = _layer_norm(q1, ln2_w, ln2_b)
    h1 = jnp.dot(xn, wfc1_ref[...], preferred_element_type=jnp.float32) + bfc1_ref[...]
    h1 = _gelu_exact(h1)
    h2 = jnp.dot(h1, wfc2_ref[...], preferred_element_type=jnp.float32) + bfc2

    out_ref[...] = (q1 + h2).astype(out_ref.dtype)


# ------------------------------ wrapper ------------------------------
def _default_num_programs(batch):
    """Collapse the grid on single-TensorCore chips (v5e/v6e); split the batch
    across the two TensorCores of a v7x chip."""
    try:
        kind = jax.devices()[0].device_kind.lower()
    except Exception:
        kind = ""
    if ("v7" in kind or "7x" in kind) and batch % 2 == 0:
        return 2
    return 1


def cross_attention_block(q, kv, q_ape, k_ape, attn_pos, params, num_programs=None):
    """q: (B, L_q, C), kv: (B, L_kv, C) -> (B, L_q, C)."""
    Bq, Lq, Cc = q.shape
    Lkv = kv.shape[1]
    H, D = NUM_HEADS, HEAD_DIM

    NP = _default_num_programs(Bq) if num_programs is None else int(num_programs)
    if Bq % NP != 0:
        NP = 1
    Bp = Bq // NP            # batches per program
    Gp = Bp * H              # (batch*head) entries per program

    wq, wk, wv, wproj = params["wq"], params["wk"], params["wv"], params["wproj"]

    # --- activations as 2-D row slabs (row-wise ops see (B*L, C)) ---------
    q2 = q.reshape(Bq * Lq, Cc)
    kv2 = kv.reshape(Bq * Lkv, Cc)

    # --- per-(batch, head) weights, b-major ordering g = b*H + h ----------
    def per_head_cols(w):                        # (C, C) -> (H, C, D)
        return w.reshape(Cc, H, D).transpose(1, 0, 2)

    def tile_batch(x):                           # (H, ...) -> (B*H, ...)
        return jnp.tile(x, (Bq,) + (1,) * (x.ndim - 1))

    wq_g = tile_batch(per_head_cols(wq))                                  # (B*H, C, D)
    wkv_g = tile_batch(jnp.concatenate([per_head_cols(wk),
                                        per_head_cols(wv)], axis=-1))     # (B*H, C, 2D)
    wproj_g = tile_batch(wproj.reshape(H, D, Cc))                         # (B*H, D, C)

    # --- absolute positional encodings pre-projected per head (one-off XLA) ---
    qape_b = jnp.broadcast_to(q_ape, (Bq, Lq, Cc))
    kape_b = jnp.broadcast_to(k_ape, (Bq, Lkv, Cc))
    qape_g = (qape_b @ wq).reshape(Bq, Lq, H, D).transpose(0, 2, 1, 3).reshape(Bq * H, Lq, D)
    kape_g = (kape_b @ wk).reshape(Bq, Lkv, H, D).transpose(0, 2, 1, 3).reshape(Bq * H, Lkv, D)
    apos_g = jnp.broadcast_to(attn_pos, (Bq, H, Lq, Lkv)).reshape(Bq * H, Lq, Lkv)

    # --- pack the small bias / LayerNorm vectors into two DMAs ------------
    def vec(name):
        return params[name].reshape(Cc)

    vecs = jnp.stack([vec("ln1q_w"), vec("ln1q_b"),
                      vec("ln1kv_w"), vec("ln1kv_b"),
                      vec("ln2_w"), vec("ln2_b"),
                      params["bproj"].reshape(Cc),
                      params["bfc2"].reshape(Cc)], axis=0)                # (8, C)
    bfc1r = params["bfc1"].reshape(1, -1)                                 # (1, HIDDEN)
    wfc1, wfc2 = params["wfc1"], params["wfc2"]

    # --- BlockSpecs: split batch / batch*head rows across NP programs -----
    def rows_spec(arr, rows_per):
        nd = arr.ndim
        return pl.BlockSpec((rows_per,) + arr.shape[1:],
                            lambda i, _nd=nd: (i,) + (0,) * (_nd - 1))

    def shared_spec(arr):
        nd = arr.ndim
        return pl.BlockSpec(arr.shape, lambda i, _nd=nd: (0,) * _nd)

    in_specs = [
        rows_spec(q2, Bp * Lq),
        rows_spec(kv2, Bp * Lkv),
        rows_spec(qape_g, Gp),
        rows_spec(kape_g, Gp),
        rows_spec(apos_g, Gp),
        rows_spec(wq_g, Gp),
        rows_spec(wkv_g, Gp),
        rows_spec(wproj_g, Gp),
        shared_spec(wfc1),
        shared_spec(wfc2),
        shared_spec(vecs),
        shared_spec(bfc1r),
    ]

    out = pl.pallas_call(
        partial(_cab_kernel, bp=Bp, lq=Lq, lkv=Lkv),
        out_shape=jax.ShapeDtypeStruct((Bq * Lq, Cc), q.dtype),
        grid=(NP,),
        in_specs=in_specs,
        out_specs=pl.BlockSpec((Bp * Lq, Cc), lambda i: (i, 0)),
        compiler_params=pltpu.CompilerParams(dimension_semantics=("parallel",)),
    )(q2, kv2, qape_g, kape_g, apos_g, wq_g, wkv_g, wproj_g, wfc1, wfc2, vecs, bfc1r)

    return out.reshape(Bq, Lq, Cc)


# --------------------------- pure-JAX reference ---------------------------
def reference(q, kv, q_ape, k_ape, attn_pos, p):
    qn = _layer_norm(q, p["ln1q_w"], p["ln1q_b"])
    kvn = _layer_norm(kv, p["ln1kv_w"], p["ln1kv_b"])
    qp = (qn + q_ape) @ p["wq"]
    kp = (kvn + k_ape) @ p["wk"]
    vp = kvn @ p["wv"]

    def split(x, L):
        return x.reshape(x.shape[0], L, NUM_HEADS, HEAD_DIM).transpose(0, 2, 1, 3)

    qh, kh, vh = split(qp, L_Q), split(kp, L_KV), split(vp, L_KV)
    attn = jnp.einsum("bhqd,bhkd->bhqk", qh, kh) * SCALE + attn_pos
    attn = jax.nn.softmax(attn, axis=-1)
    x = jnp.einsum("bhqk,bhkd->bhqd", attn, vh)
    x = x.transpose(0, 2, 1, 3).reshape(q.shape[0], L_Q, C)
    x = x @ p["wproj"] + p["bproj"]
    q1 = q + x
    xn = _layer_norm(q1, p["ln2_w"], p["ln2_b"])
    h1 = _gelu_exact(xn @ p["wfc1"] + p["bfc1"])
    h2 = h1 @ p["wfc2"] + p["bfc2"]
    return q1 + h2


# -------------------------------- main --------------------------------
if __name__ == "__main__":
    key = jax.random.PRNGKey(0)
    keys = jax.random.split(key, 24)

    def rnd(k, shape, scale=0.05):
        return jax.random.normal(k, shape, dtype=jnp.float32) * scale

    # Linear weights stored as (in_features, out_features): y = x @ W + b.
    params = {
        "ln1q_w": jnp.ones((1, C), jnp.float32) + rnd(keys[0], (1, C)),
        "ln1q_b": rnd(keys[1], (1, C)),
        "ln1kv_w": jnp.ones((1, C), jnp.float32) + rnd(keys[2], (1, C)),
        "ln1kv_b": rnd(keys[3], (1, C)),
        "wq": rnd(keys[4], (C, C)),
        "wk": rnd(keys[5], (C, C)),
        "wv": rnd(keys[6], (C, C)),
        "wproj": rnd(keys[7], (C, C)),
        "bproj": rnd(keys[8], (1, C)),
        "ln2_w": jnp.ones((1, C), jnp.float32) + rnd(keys[9], (1, C)),
        "ln2_b": rnd(keys[10], (1, C)),
        "wfc1": rnd(keys[11], (C, HIDDEN)),
        "bfc1": rnd(keys[12], (1, HIDDEN)),
        "wfc2": rnd(keys[13], (HIDDEN, C)),
        "bfc2": rnd(keys[14], (1, C)),
    }

    q = rnd(keys[15], (B, L_Q, C), scale=1.0)
    kv = rnd(keys[16], (B, L_KV, C), scale=1.0)
    q_ape = rnd(keys[17], (1, L_Q, C), scale=1.0)
    k_ape = rnd(keys[18], (1, L_KV, C), scale=1.0)
    attn_pos = rnd(keys[19], (1, NUM_HEADS, L_Q, L_KV), scale=1.0)

    out = cross_attention_block(q, kv, q_ape, k_ape, attn_pos, params)
    out = jax.block_until_ready(out)

    ref = jax.block_until_ready(reference(q, kv, q_ape, k_ape, attn_pos, params))
    # tolerance loosened slightly (2e-3) because of the EUP approximate
    # reciprocal used for the softmax denominator.
    np.testing.assert_allclose(np.asarray(out), np.asarray(ref), rtol=2e-3, atol=2e-3)

    print("KERNEL_OK")
</pallas_src>

<mosaic_0001>
module attributes {stable_mosaic.version = 11 : i64} {
  func.func @_cab_kernel(%arg0: i32, %arg1: memref<32x32xf32, #tpu.memory_space<vmem>>, %arg2: memref<16x32xf32, #tpu.memory_space<vmem>>, %arg3: memref<8x16x8xf32, #tpu.memory_space<vmem>>, %arg4: memref<8x8x8xf32, #tpu.memory_space<vmem>>, %arg5: memref<8x16x8xf32, #tpu.memory_space<vmem>>, %arg6: memref<8x32x8xf32, #tpu.memory_space<vmem>>, %arg7: memref<8x32x16xf32, #tpu.memory_space<vmem>>, %arg8: memref<8x8x32xf32, #tpu.memory_space<vmem>>, %arg9: memref<32x128xf32, #tpu.memory_space<vmem>>, %arg10: memref<128x32xf32, #tpu.memory_space<vmem>>, %arg11: memref<8x32xf32, #tpu.memory_space<vmem>>, %arg12: memref<1x128xf32, #tpu.memory_space<vmem>>, %arg13: memref<32x32xf32, #tpu.memory_space<vmem>>) attributes {dimension_semantics = [#tpu.dimension_semantics<parallel>], iteration_bounds = array<i64: 1>, scalar_prefetch = 0 : i64, scratch_operands = 0 : i64, tpu.core_type = #tpu.core_type<tc>, window_params = [{transform_indices = @transform_0, window_bounds = array<i64: 32, 32>}, {transform_indices = @transform_1, window_bounds = array<i64: 16, 32>}, {transform_indices = @transform_2, window_bounds = array<i64: 8, 16, 8>}, {transform_indices = @transform_3, window_bounds = array<i64: 8, 8, 8>}, {transform_indices = @transform_4, window_bounds = array<i64: 8, 16, 8>}, {transform_indices = @transform_5, window_bounds = array<i64: 8, 32, 8>}, {transform_indices = @transform_6, window_bounds = array<i64: 8, 32, 16>}, {transform_indices = @transform_7, window_bounds = array<i64: 8, 8, 32>}, {pipeline_mode = #tpu.pipeline_mode<synchronous>, transform_indices = @transform_8, window_bounds = array<i64: 32, 128>}, {pipeline_mode = #tpu.pipeline_mode<synchronous>, transform_indices = @transform_9, window_bounds = array<i64: 128, 32>}, {pipeline_mode = #tpu.pipeline_mode<synchronous>, transform_indices = @transform_10, window_bounds = array<i64: 8, 32>}, {pipeline_mode = #tpu.pipeline_mode<synchronous>, transform_indices = @transform_11, window_bounds = array<i64: 1, 128>}, {transform_indices = @transform_12, window_bounds = array<i64: 32, 32>}]} {
    %c0 = arith.constant 0 : index
    %c0_0 = arith.constant 0 : index
    %0 = vector.load %arg1[%c0, %c0_0] : memref<32x32xf32, #tpu.memory_space<vmem>>, vector<32x32xf32>
    %c0_1 = arith.constant 0 : index
    %c0_2 = arith.constant 0 : index
    %1 = vector.load %arg2[%c0_1, %c0_2] : memref<16x32xf32, #tpu.memory_space<vmem>>, vector<16x32xf32>
    %c0_3 = arith.constant 0 : index
    %c0_4 = arith.constant 0 : index
    %2 = vector.load %arg11[%c0_3, %c0_4] : memref<8x32xf32, #tpu.memory_space<vmem>>, vector<8x32xf32>
    %3 = vector.extract_strided_slice %2 {offsets = [0, 0], sizes = [1, 32], strides = [1, 1]} : vector<8x32xf32> to vector<1x32xf32>
    %4 = vector.extract_strided_slice %2 {offsets = [1, 0], sizes = [1, 32], strides = [1, 1]} : vector<8x32xf32> to vector<1x32xf32>
    %5 = vector.extract_strided_slice %2 {offsets = [2, 0], sizes = [1, 32], strides = [1, 1]} : vector<8x32xf32> to vector<1x32xf32>
    %6 = vector.extract_strided_slice %2 {offsets = [3, 0], sizes = [1, 32], strides = [1, 1]} : vector<8x32xf32> to vector<1x32xf32>
    %7 = vector.extract_strided_slice %2 {offsets = [4, 0], sizes = [1, 32], strides = [1, 1]} : vector<8x32xf32> to vector<1x32xf32>
    %8 = vector.extract_strided_slice %2 {offsets = [5, 0], sizes = [1, 32], strides = [1, 1]} : vector<8x32xf32> to vector<1x32xf32>
    %9 = vector.extract_strided_slice %2 {offsets = [6, 0], sizes = [1, 32], strides = [1, 1]} : vector<8x32xf32> to vector<1x32xf32>
    %10 = vector.extract_strided_slice %2 {offsets = [7, 0], sizes = [1, 32], strides = [1, 1]} : vector<8x32xf32> to vector<1x32xf32>
    %cst = arith.constant dense<0.000000e+00> : vector<32xf32>
    %11 = vector.multi_reduction <add>, %0, %cst [1] : vector<32x32xf32> to vector<32xf32>
    %12 = vector.shape_cast %11 : vector<32xf32> to vector<32x1xf32>
    %cst_5 = arith.constant 3.200000e+01 : f32
    %13 = vector.broadcast %cst_5 : f32 to vector<32x1xf32>
    %14 = arith.divf %12, %13 : vector<32x1xf32>
    %15 = vector.broadcast %14 : vector<32x1xf32> to vector<32x32xf32>
    %16 = arith.subf %0, %15 : vector<32x32xf32>
    %17 = arith.mulf %16, %16 : vector<32x32xf32>
    %cst_6 = arith.constant dense<0.000000e+00> : vector<32xf32>
    %18 = vector.multi_reduction <add>, %17, %cst_6 [1] : vector<32x32xf32> to vector<32xf32>
    %19 = vector.shape_cast %18 : vector<32xf32> to vector<32x1xf32>
    %cst_7 = arith.constant 3.200000e+01 : f32
    %20 = vector.broadcast %cst_7 : f32 to vector<32x1xf32>
    %21 = arith.divf %19, %20 : vector<32x1xf32>
    %22 = vector.broadcast %14 : vector<32x1xf32> to vector<32x32xf32>
    %23 = arith.subf %0, %22 : vector<32x32xf32>
    %cst_8 = arith.constant 9.99999974E-6 : f32
    %24 = vector.broadcast %cst_8 : f32 to vector<32x1xf32>
    %25 = arith.addf %21, %24 : vector<32x1xf32>
    %26 = math.rsqrt %25 : vector<32x1xf32>
    %27 = vector.broadcast %26 : vector<32x1xf32> to vector<32x32xf32>
    %28 = arith.mulf %23, %27 : vector<32x32xf32>
    %29 = vector.broadcast %3 : vector<1x32xf32> to vector<32x32xf32>
    %30 = arith.mulf %28, %29 : vector<32x32xf32>
    %31 = vector.broadcast %4 : vector<1x32xf32> to vector<32x32xf32>
    %32 = arith.addf %30, %31 : vector<32x32xf32>
    %cst_9 = arith.constant dense<0.000000e+00> : vector<16xf32>
    %33 = vector.multi_reduction <add>, %1, %cst_9 [1] : vector<16x32xf32> to vector<16xf32>
    %34 = vector.shape_cast %33 : vector<16xf32> to vector<16x1xf32>
    %cst_10 = arith.constant 3.200000e+01 : f32
    %35 = vector.broadcast %cst_10 : f32 to vector<16x1xf32>
    %36 = arith.divf %34, %35 : vector<16x1xf32>
    %37 = vector.broadcast %36 : vector<16x1xf32> to vector<16x32xf32>
    %38 = arith.subf %1, %37 : vector<16x32xf32>
    %39 = arith.mulf %38, %38 : vector<16x32xf32>
    %cst_11 = arith.constant dense<0.000000e+00> : vector<16xf32>
    %40 = vector.multi_reduction <add>, %39, %cst_11 [1] : vector<16x32xf32> to vector<16xf32>
    %41 = vector.shape_cast %40 : vector<16xf32> to vector<16x1xf32>
    %cst_12 = arith.constant 3.200000e+01 : f32
    %42 = vector.broadcast %cst_12 : f32 to vector<16x1xf32>
    %43 = arith.divf %41, %42 : vector<16x1xf32>
    %44 = vector.broadcast %36 : vector<16x1xf32> to vector<16x32xf32>
    %45 = arith.subf %1, %44 : vector<16x32xf32>
    %cst_13 = arith.constant 9.99999974E-6 : f32
    %46 = vector.broadcast %cst_13 : f32 to vector<16x1xf32>
    %47 = arith.addf %43, %46 : vector<16x1xf32>
    %48 = math.rsqrt %47 : vector<16x1xf32>
    %49 = vector.broadcast %48 : vector<16x1xf32> to vector<16x32xf32>
    %50 = arith.mulf %45, %49 : vector<16x32xf32>
    %51 = vector.broadcast %5 : vector<1x32xf32> to vector<16x32xf32>
    %52 = arith.mulf %50, %51 : vector<16x32xf32>
    %53 = vector.broadcast %6 : vector<1x32xf32> to vector<16x32xf32>
    %54 = arith.addf %52, %53 : vector<16x32xf32>
    %55 = vector.extract_strided_slice %32 {offsets = [0, 0], sizes = [16, 32], strides = [1, 1]} : vector<32x32xf32> to vector<16x32xf32>
    %56 = vector.extract_strided_slice %32 {offsets = [0, 0], sizes = [16, 32], strides = [1, 1]} : vector<32x32xf32> to vector<16x32xf32>
    %57 = vector.extract_strided_slice %32 {offsets = [0, 0], sizes = [16, 32], strides = [1, 1]} : vector<32x32xf32> to vector<16x32xf32>
    %58 = vector.extract_strided_slice %32 {offsets = [0, 0], sizes = [16, 32], strides = [1, 1]} : vector<32x32xf32> to vector<16x32xf32>
    %59 = vector.extract_strided_slice %32 {offsets = [16, 0], sizes = [16, 32], strides = [1, 1]} : vector<32x32xf32> to vector<16x32xf32>
    %60 = vector.extract_strided_slice %32 {offsets = [16, 0], sizes = [16, 32], strides = [1, 1]} : vector<32x32xf32> to vector<16x32xf32>
    %61 = vector.extract_strided_slice %32 {offsets = [16, 0], sizes = [16, 32], strides = [1, 1]} : vector<32x32xf32> to vector<16x32xf32>
    %62 = vector.extract_strided_slice %32 {offsets = [16, 0], sizes = [16, 32], strides = [1, 1]} : vector<32x32xf32> to vector<16x32xf32>
    %63 = vector.shape_cast %55 : vector<16x32xf32> to vector<1x16x32xf32>
    %64 = vector.shape_cast %56 : vector<16x32xf32> to vector<1x16x32xf32>
    %65 = vector.shape_cast %57 : vector<16x32xf32> to vector<1x16x32xf32>
    %66 = vector.shape_cast %58 : vector<16x32xf32> to vector<1x16x32xf32>
    %67 = vector.shape_cast %59 : vector<16x32xf32> to vector<1x16x32xf32>
    %68 = vector.shape_cast %60 : vector<16x32xf32> to vector<1x16x32xf32>
    %69 = vector.shape_cast %61 : vector<16x32xf32> to vector<1x16x32xf32>
    %70 = vector.shape_cast %62 : vector<16x32xf32> to vector<1x16x32xf32>
    %71 = tpu.concatenate %63, %64, %65, %66, %67, %68, %69, %70 in 0 : vector<1x16x32xf32>, vector<1x16x32xf32>, vector<1x16x32xf32>, vector<1x16x32xf32>, vector<1x16x32xf32>, vector<1x16x32xf32>, vector<1x16x32xf32>, vector<1x16x32xf32> -> vector<8x16x32xf32>
    %72 = vector.extract_strided_slice %54 {offsets = [0, 0], sizes = [8, 32], strides = [1, 1]} : vector<16x32xf32> to vector<8x32xf32>
    %73 = vector.extract_strided_slice %54 {offsets = [0, 0], sizes = [8, 32], strides = [1, 1]} : vector<16x32xf32> to vector<8x32xf32>
    %74 = vector.extract_strided_slice %54 {offsets = [0, 0], sizes = [8, 32], strides = [1, 1]} : vector<16x32xf32> to vector<8x32xf32>
    %75 = vector.extract_strided_slice %54 {offsets = [0, 0], sizes = [8, 32], strides = [1, 1]} : vector<16x32xf32> to vector<8x32xf32>
    %76 = vector.extract_strided_slice %54 {offsets = [8, 0], sizes = [8, 32], strides = [1, 1]} : vector<16x32xf32> to vector<8x32xf32>
    %77 = vector.extract_strided_slice %54 {offsets = [8, 0], sizes = [8, 32], strides = [1, 1]} : vector<16x32xf32> to vector<8x32xf32>
    %78 = vector.extract_strided_slice %54 {offsets = [8, 0], sizes = [8, 32], strides = [1, 1]} : vector<16x32xf32> to vector<8x32xf32>
    %79 = vector.extract_strided_slice %54 {offsets = [8, 0], sizes = [8, 32], strides = [1, 1]} : vector<16x32xf32> to vector<8x32xf32>
    %80 = vector.shape_cast %72 : vector<8x32xf32> to vector<1x8x32xf32>
    %81 = vector.shape_cast %73 : vector<8x32xf32> to vector<1x8x32xf32>
    %82 = vector.shape_cast %74 : vector<8x32xf32> to vector<1x8x32xf32>
    %83 = vector.shape_cast %75 : vector<8x32xf32> to vector<1x8x32xf32>
    %84 = vector.shape_cast %76 : vector<8x32xf32> to vector<1x8x32xf32>
    %85 = vector.shape_cast %77 : vector<8x32xf32> to vector<1x8x32xf32>
    %86 = vector.shape_cast %78 : vector<8x32xf32> to vector<1x8x32xf32>
    %87 = vector.shape_cast %79 : vector<8x32xf32> to vector<1x8x32xf32>
    %88 = tpu.concatenate %80, %81, %82, %83, %84, %85, %86, %87 in 0 : vector<1x8x32xf32>, vector<1x8x32xf32>, vector<1x8x32xf32>, vector<1x8x32xf32>, vector<1x8x32xf32>, vector<1x8x32xf32>, vector<1x8x32xf32>, vector<1x8x32xf32> -> vector<8x8x32xf32>
    %c0_14 = arith.constant 0 : index
    %c0_15 = arith.constant 0 : index
    %c0_16 = arith.constant 0 : index
    %89 = vector.load %arg6[%c0_14, %c0_15, %c0_16] : memref<8x32x8xf32, #tpu.memory_space<vmem>>, vector<8x32x8xf32>
    "tpu.trace_start"() <{level = 10 : i32, message = "glc,gcd->gld"}> : () -> ()
    %cst_17 = arith.constant dense<0.000000e+00> : vector<8x16x8xf32>
    %90 = tpu.matmul %71, %89, %cst_17 {dimension_numbers = #tpu.dot_dimension_numbers<[2], [1], [1], [2], [0, 0, 0, 1, 1, 2], [0], [0]>} : vector<8x16x32xf32>, vector<8x32x8xf32>, vector<8x16x8xf32> -> vector<8x16x8xf32>
    "tpu.trace_stop"() : () -> ()
    %c0_18 = arith.constant 0 : index
    %c0_19 = arith.constant 0 : index
    %c0_20 = arith.constant 0 : index
    %91 = vector.load %arg3[%c0_18, %c0_19, %c0_20] : memref<8x16x8xf32, #tpu.memory_space<vmem>>, vector<8x16x8xf32>
    %92 = arith.addf %90, %91 : vector<8x16x8xf32>
    %c0_21 = arith.constant 0 : index
    %c0_22 = arith.constant 0 : index
    %c0_23 = arith.constant 0 : index
    %93 = vector.load %arg7[%c0_21, %c0_22, %c0_23] : memref<8x32x16xf32, #tpu.memory_space<vmem>>, vector<8x32x16xf32>
    "tpu.trace_start"() <{level = 10 : i32, message = "glc,gcd->gld"}> : () -> ()
    %cst_24 = arith.constant dense<0.000000e+00> : vector<8x8x16xf32>
    %94 = tpu.matmul %88, %93, %cst_24 {dimension_numbers = #tpu.dot_dimension_numbers<[2], [1], [1], [2], [0, 0, 0, 1, 1, 2], [0], [0]>} : vector<8x8x32xf32>, vector<8x32x16xf32>, vector<8x8x16xf32> -> vector<8x8x16xf32>
    "tpu.trace_stop"() : () -> ()
    %95 = vector.extract_strided_slice %94 {offsets = [0, 0, 0], sizes = [8, 8, 8], strides = [1, 1, 1]} : vector<8x8x16xf32> to vector<8x8x8xf32>
    %c0_25 = arith.constant 0 : index
    %c0_26 = arith.constant 0 : index
    %c0_27 = arith.constant 0 : index
    %96 = vector.load %arg4[%c0_25, %c0_26, %c0_27] : memref<8x8x8xf32, #tpu.memory_space<vmem>>, vector<8x8x8xf32>
    %97 = arith.addf %95, %96 : vector<8x8x8xf32>
    %98 = vector.extract_strided_slice %94 {offsets = [0, 0, 8], sizes = [8, 8, 8], strides = [1, 1, 1]} : vector<8x8x16xf32> to vector<8x8x8xf32>
    "tpu.trace_start"() <{level = 10 : i32, message = "gqd,gkd->gqk"}> : () -> ()
    %cst_28 = arith.constant dense<0.000000e+00> : vector<8x16x8xf32>
    %99 = tpu.matmul %92, %97, %cst_28 {dimension_numbers = #tpu.dot_dimension_numbers<[2], [2], [1], [1], [0, 0, 0, 1, 1, 1], [0], [0]>} : vector<8x16x8xf32>, vector<8x8x8xf32>, vector<8x16x8xf32> -> vector<8x16x8xf32>
    "tpu.trace_stop"() : () -> ()
    %cst_29 = arith.constant 0.353553385 : f32
    %100 = vector.broadcast %cst_29 : f32 to vector<8x16x8xf32>
    %101 = arith.mulf %99, %100 : vector<8x16x8xf32>
    %c0_30 = arith.constant 0 : index
    %c0_31 = arith.constant 0 : index
    %c0_32 = arith.constant 0 : index
    %102 = vector.load %arg5[%c0_30, %c0_31, %c0_32] : memref<8x16x8xf32, #tpu.memory_space<vmem>>, vector<8x16x8xf32>
    %103 = arith.addf %101, %102 : vector<8x16x8xf32>
    %cst_33 = arith.constant dense<0xFF800000> : vector<8x16xf32>
    %104 = vector.multi_reduction <maximumf>, %103, %cst_33 [2] : vector<8x16x8xf32> to vector<8x16xf32>
    %105 = vector.shape_cast %104 : vector<8x16xf32> to vector<8x16x1xf32>
    %106 = vector.broadcast %105 : vector<8x16x1xf32> to vector<8x16x8xf32>
    %107 = arith.subf %103, %106 : vector<8x16x8xf32>
    %108 = math.exp %107 : vector<8x16x8xf32>
    %cst_34 = arith.constant dense<0.000000e+00> : vector<8x16xf32>
    %109 = vector.multi_reduction <add>, %108, %cst_34 [2] : vector<8x16x8xf32> to vector<8x16xf32>
    %110 = vector.shape_cast %109 : vector<8x16xf32> to vector<8x16x1xf32>
    %111 = tpu.reciprocal %110 {approx = true} : vector<8x16x1xf32> -> vector<8x16x1xf32>
    %112 = vector.broadcast %111 : vector<8x16x1xf32> to vector<8x16x8xf32>
    %113 = arith.mulf %108, %112 : vector<8x16x8xf32>
    "tpu.trace_start"() <{level = 10 : i32, message = "gqk,gkd->gqd"}> : () -> ()
    %cst_35 = arith.constant dense<0.000000e+00> : vector<8x16x8xf32>
    %114 = tpu.matmul %113, %98, %cst_35 {dimension_numbers = #tpu.dot_dimension_numbers<[2], [1], [1], [2], [0, 0, 0, 1, 1, 2], [0], [0]>} : vector<8x16x8xf32>, vector<8x8x8xf32>, vector<8x16x8xf32> -> vector<8x16x8xf32>
    "tpu.trace_stop"() : () -> ()
    %c0_36 = arith.constant 0 : index
    %c0_37 = arith.constant 0 : index
    %c0_38 = arith.constant 0 : index
    %115 = vector.load %arg8[%c0_36, %c0_37, %c0_38] : memref<8x8x32xf32, #tpu.memory_space<vmem>>, vector<8x8x32xf32>
    "tpu.trace_start"() <{level = 10 : i32, message = "gqd,gdc->gqc"}> : () -> ()
    %cst_39 = arith.constant dense<0.000000e+00> : vector<8x16x32xf32>
    %116 = tpu.matmul %114, %115, %cst_39 {dimension_numbers = #tpu.dot_dimension_numbers<[2], [1], [1], [2], [0, 0, 0, 1, 1, 2], [0], [0]>} : vector<8x16x8xf32>, vector<8x8x32xf32>, vector<8x16x32xf32> -> vector<8x16x32xf32>
    "tpu.trace_stop"() : () -> ()
    %117 = vector.extract_strided_slice %116 {offsets = [0, 0, 0], sizes = [1, 16, 32], strides = [1, 1, 1]} : vector<8x16x32xf32> to vector<1x16x32xf32>
    %118 = vector.shape_cast %117 : vector<1x16x32xf32> to vector<16x32xf32>
    %119 = vector.extract_strided_slice %116 {offsets = [1, 0, 0], sizes = [1, 16, 32], strides = [1, 1, 1]} : vector<8x16x32xf32> to vector<1x16x32xf32>
    %120 = vector.shape_cast %119 : vector<1x16x32xf32> to vector<16x32xf32>
    %121 = arith.addf %118, %120 : vector<16x32xf32>
    %122 = vector.extract_strided_slice %116 {offsets = [2, 0, 0], sizes = [1, 16, 32], strides = [1, 1, 1]} : vector<8x16x32xf32> to vector<1x16x32xf32>
    %123 = vector.shape_cast %122 : vector<1x16x32xf32> to vector<16x32xf32>
    %124 = arith.addf %121, %123 : vector<16x32xf32>
    %125 = vector.extract_strided_slice %116 {offsets = [3, 0, 0], sizes = [1, 16, 32], strides = [1, 1, 1]} : vector<8x16x32xf32> to vector<1x16x32xf32>
    %126 = vector.shape_cast %125 : vector<1x16x32xf32> to vector<16x32xf32>
    %127 = arith.addf %124, %126 : vector<16x32xf32>
    %128 = vector.extract_strided_slice %116 {offsets = [4, 0, 0], sizes = [1, 16, 32], strides = [1, 1, 1]} : vector<8x16x32xf32> to vector<1x16x32xf32>
    %129 = vector.shape_cast %128 : vector<1x16x32xf32> to vector<16x32xf32>
    %130 = vector.extract_strided_slice %116 {offsets = [5, 0, 0], sizes = [1, 16, 32], strides = [1, 1, 1]} : vector<8x16x32xf32> to vector<1x16x32xf32>
    %131 = vector.shape_cast %130 : vector<1x16x32xf32> to vector<16x32xf32>
    %132 = arith.addf %129, %131 : vector<16x32xf32>
    %133 = vector.extract_strided_slice %116 {offsets = [6, 0, 0], sizes = [1, 16, 32], strides = [1, 1, 1]} : vector<8x16x32xf32> to vector<1x16x32xf32>
    %134 = vector.shape_cast %133 : vector<1x16x32xf32> to vector<16x32xf32>
    %135 = arith.addf %132, %134 : vector<16x32xf32>
    %136 = vector.extract_strided_slice %116 {offsets = [7, 0, 0], sizes = [1, 16, 32], strides = [1, 1, 1]} : vector<8x16x32xf32> to vector<1x16x32xf32>
    %137 = vector.shape_cast %136 : vector<1x16x32xf32> to vector<16x32xf32>
    %138 = arith.addf %135, %137 : vector<16x32xf32>
    %139 = tpu.concatenate %127, %138 in 0 : vector<16x32xf32>, vector<16x32xf32> -> vector<32x32xf32>
    %140 = arith.addf %0, %139 : vector<32x32xf32>
    %141 = vector.broadcast %9 : vector<1x32xf32> to vector<32x32xf32>
    %142 = arith.addf %140, %141 : vector<32x32xf32>
    %cst_40 = arith.constant dense<0.000000e+00> : vector<32xf32>
    %143 = vector.multi_reduction <add>, %142, %cst_40 [1] : vector<32x32xf32> to vector<32xf32>
    %144 = vector.shape_cast %143 : vector<32xf32> to vector<32x1xf32>
    %cst_41 = arith.constant 3.200000e+01 : f32
    %145 = vector.broadcast %cst_41 : f32 to vector<32x1xf32>
    %146 = arith.divf %144, %145 : vector<32x1xf32>
    %147 = vector.broadcast %146 : vector<32x1xf32> to vector<32x32xf32>
    %148 = arith.subf %142, %147 : vector<32x32xf32>
    %149 = arith.mulf %148, %148 : vector<32x32xf32>
    %cst_42 = arith.constant dense<0.000000e+00> : vector<32xf32>
    %150 = vector.multi_reduction <add>, %149, %cst_42 [1] : vector<32x32xf32> to vector<32xf32>
    %151 = vector.shape_cast %150 : vector<32xf32> to vector<32x1xf32>
    %cst_43 = arith.constant 3.200000e+01 : f32
    %152 = vector.broadcast %cst_43 : f32 to vector<32x1xf32>
    %153 = arith.divf %151, %152 : vector<32x1xf32>
    %154 = vector.broadcast %146 : vector<32x1xf32> to vector<32x32xf32>
    %155 = arith.subf %142, %154 : vector<32x32xf32>
    %cst_44 = arith.constant 9.99999974E-6 : f32
    %156 = vector.broadcast %cst_44 : f32 to vector<32x1xf32>
    %157 = arith.addf %153, %156 : vector<32x1xf32>
    %158 = math.rsqrt %157 : vector<32x1xf32>
    %159 = vector.broadcast %158 : vector<32x1xf32> to vector<32x32xf32>
    %160 = arith.mulf %155, %159 : vector<32x32xf32>
    %161 = vector.broadcast %7 : vector<1x32xf32> to vector<32x32xf32>
    %162 = arith.mulf %160, %161 : vector<32x32xf32>
    %163 = vector.broadcast %8 : vector<1x32xf32> to vector<32x32xf32>
    %164 = arith.addf %162, %163 : vector<32x32xf32>
    %c0_45 = arith.constant 0 : index
    %c0_46 = arith.constant 0 : index
    %165 = vector.load %arg9[%c0_45, %c0_46] : memref<32x128xf32, #tpu.memory_space<vmem>>, vector<32x128xf32>
    %cst_47 = arith.constant dense<0.000000e+00> : vector<32x128xf32>
    %166 = tpu.matmul %164, %165, %cst_47 {dimension_numbers = #tpu.dot_dimension_numbers<[1], [0], [0], [1], [0, 0, 1, 1], [], []>} : vector<32x32xf32>, vector<32x128xf32>, vector<32x128xf32> -> vector<32x128xf32>
    %c0_48 = arith.constant 0 : index
    %c0_49 = arith.constant 0 : index
    %167 = vector.load %arg12[%c0_48, %c0_49] : memref<1x128xf32, #tpu.memory_space<vmem>>, vector<1x128xf32>
    %168 = vector.broadcast %167 : vector<1x128xf32> to vector<32x128xf32>
    %169 = arith.addf %166, %168 : vector<32x128xf32>
    %cst_50 = arith.constant 5.000000e-01 : f32
    %170 = vector.broadcast %cst_50 : f32 to vector<32x128xf32>
    %171 = arith.mulf %170, %169 : vector<32x128xf32>
    %cst_51 = arith.constant 0.707106769 : f32
    %172 = vector.broadcast %cst_51 : f32 to vector<32x128xf32>
    %173 = arith.mulf %169, %172 : vector<32x128xf32>
    %174 = math.erf %173 : vector<32x128xf32>
    %cst_52 = arith.constant 1.000000e+00 : f32
    %175 = vector.broadcast %cst_52 : f32 to vector<32x128xf32>
    %176 = arith.addf %175, %174 : vector<32x128xf32>
    %177 = arith.mulf %171, %176 : vector<32x128xf32>
    %c0_53 = arith.constant 0 : index
    %c0_54 = arith.constant 0 : index
    %178 = vector.load %arg10[%c0_53, %c0_54] : memref<128x32xf32, #tpu.memory_space<vmem>>, vector<128x32xf32>
    %cst_55 = arith.constant dense<0.000000e+00> : vector<32x32xf32>
    %179 = tpu.matmul %177, %178, %cst_55 {dimension_numbers = #tpu.dot_dimension_numbers<[1], [0], [0], [1], [0, 0, 1, 1], [], []>} : vector<32x128xf32>, vector<128x32xf32>, vector<32x32xf32> -> vector<32x32xf32>
    %180 = vector.broadcast %10 : vector<1x32xf32> to vector<32x32xf32>
    %181 = arith.addf %179, %180 : vector<32x32xf32>
    %182 = arith.addf %142, %181 : vector<32x32xf32>
    %c0_56 = arith.constant 0 : index
    %c0_57 = arith.constant 0 : index
    %183 = vector.load %arg13[%c0_56, %c0_57] : memref<32x32xf32, #tpu.memory_space<vmem>>, vector<32x32xf32>
    tpu.vector_store %arg13[%c0_56, %c0_57], %182 {strides = array<i32>} : memref<32x32xf32, #tpu.memory_space<vmem>>, vector<32x32xf32>,
    return
  }
  func.func @transform_0(%arg0: i32) -> (i32, i32) {
    %c0_i32 = arith.constant 0 : i32
    %c0_i32_0 = arith.constant 0 : i32
    return %arg0, %c0_i32 : i32, i32
  }
  func.func @transform_1(%arg0: i32) -> (i32, i32) {
    %c0_i32 = arith.constant 0 : i32
    %c0_i32_0 = arith.constant 0 : i32
    return %arg0, %c0_i32 : i32, i32
  }
  func.func @transform_2(%arg0: i32) -> (i32, i32, i32) {
    %c0_i32 = arith.constant 0 : i32
    %c0_i32_0 = arith.constant 0 : i32
    %c0_i32_1 = arith.constant 0 : i32
    return %arg0, %c0_i32, %c0_i32_0 : i32, i32, i32
  }
  func.func @transform_3(%arg0: i32) -> (i32, i32, i32) {
    %c0_i32 = arith.constant 0 : i32
    %c0_i32_0 = arith.constant 0 : i32
    %c0_i32_1 = arith.constant 0 : i32
    return %arg0, %c0_i32, %c0_i32_0 : i32, i32, i32
  }
  func.func @transform_4(%arg0: i32) -> (i32, i32, i32) {
    %c0_i32 = arith.constant 0 : i32
    %c0_i32_0 = arith.constant 0 : i32
    %c0_i32_1 = arith.constant 0 : i32
    return %arg0, %c0_i32, %c0_i32_0 : i32, i32, i32
  }
  func.func @transform_5(%arg0: i32) -> (i32, i32, i32) {
    %c0_i32 = arith.constant 0 : i32
    %c0_i32_0 = arith.constant 0 : i32
    %c0_i32_1 = arith.constant 0 : i32
    return %arg0, %c0_i32, %c0_i32_0 : i32, i32, i32
  }
  func.func @transform_6(%arg0: i32) -> (i32, i32, i32) {
    %c0_i32 = arith.constant 0 : i32
    %c0_i32_0 = arith.constant 0 : i32
    %c0_i32_1 = arith.constant 0 : i32
    return %arg0, %c0_i32, %c0_i32_0 : i32, i32, i32
  }
  func.func @transform_7(%arg0: i32) -> (i32, i32, i32) {
    %c0_i32 = arith.constant 0 : i32
    %c0_i32_0 = arith.constant 0 : i32
    %c0_i32_1 = arith.constant 0 : i32
    return %arg0, %c0_i32, %c0_i32_0 : i32, i32, i32
  }
  func.func @transform_8(%arg0: i32) -> (i32, i32) {
    %c0_i32 = arith.constant 0 : i32
    %c0_i32_0 = arith.constant 0 : i32
    %c0_i32_1 = arith.constant 0 : i32
    return %c0_i32, %c0_i32_0 : i32, i32
  }
  func.func @transform_9(%arg0: i32) -> (i32, i32) {
    %c0_i32 = arith.constant 0 : i32
    %c0_i32_0 = arith.constant 0 : i32
    %c0_i32_1 = arith.constant 0 : i32
    return %c0_i32, %c0_i32_0 : i32, i32
  }
  func.func @transform_10(%arg0: i32) -> (i32, i32) {
    %c0_i32 = arith.constant 0 : i32
    %c0_i32_0 = arith.constant 0 : i32
    %c0_i32_1 = arith.constant 0 : i32
    return %c0_i32, %c0_i32_0 : i32, i32
  }
  func.func @transform_11(%arg0: i32) -> (i32, i32) {
    %c0_i32 = arith.constant 0 : i32
    %c0_i32_0 = arith.constant 0 : i32
    %c0_i32_1 = arith.constant 0 : i32
    return %c0_i32, %c0_i32_0 : i32, i32
  }
  func.func @transform_12(%arg0: i32) -> (i32, i32) {
    %c0_i32 = arith.constant 0 : i32
    %c0_i32_0 = arith.constant 0 : i32
    return %arg0, %c0_i32 : i32, i32
  }
}

</mosaic_0001>

<bundles_post_ra>
// kernel: tpu_custom_call.1
= control target key start
LH: loop header
LB: loop body
LE: loop exit
PB: predicated region body
PF: predicated region fallthrough
CT: control target
= control target key end

     0   :  { %vm49_vm0 = vcmask 261120   ;;  %s5932_s0 = inlined_call_operand.vmem [shape: f32[32,32], index: 0, kind: input, shape index: {}]   ;;  %s5933_s1 = inlined_call_operand.vmem [shape: f32[16,32], index: 1, kind: input, shape index: {}]   ;;  %s5934_s2 = inlined_call_operand.vmem [shape: f32[8,16,8], index: 2, kind: input, shape index: {}]   ;;  %s5935_s3 = inlined_call_operand.vmem [shape: f32[8,8,8], index: 3, kind: input, shape index: {}]   ;;  %s5936_s4 = inlined_call_operand.vmem [shape: f32[8,16,8], index: 4, kind: input, shape index: {}]   ;;  %s5937_s5 = inlined_call_operand.vmem [shape: f32[8,32,8], index: 5, kind: input, shape index: {}]   ;;  %s5938_s6 = inlined_call_operand.vmem [shape: f32[8,32,16], index: 6, kind: input, shape index: {}]   ;;  %s5939_s7 = inlined_call_operand.vmem [shape: f32[8,8,32], index: 7, kind: input, shape index: {}]   ;;  %s5940_s8 = inlined_call_operand.vmem [shape: f32[32,128], index: 8, kind: input, shape index: {}]   ;;  %s5941_s9 = inlined_call_operand.vmem [shape: f32[128,32], index: 9, kind: input, shape index: {}]   ;;  %s5942_s10 = inlined_call_operand.vmem [shape: f32[8,32], index: 10, kind: input, shape index: {}]   ;;  %s5943_s11 = inlined_call_operand.vmem [shape: f32[1,128], index: 11, kind: input, shape index: {}]   ;;  %s5944_s12 = inlined_call_operand.hbm [shape: f32[32,32], index: 12, kind: output, shape index: {}]  }
   0x1   :  { %v42_v0 = vld [vmem:[%s5932_s0] sm:$0xff]  ;;  %v44_v1 = vld [vmem:[%s5932_s0 + $0x10] sm:$0xff]  ;;  %v43_v2 = vld [vmem:[%s5932_s0 + $0x8] sm:$0xff] }
   0x2   :  { %v50_v3 = vsel %vm49_vm0, %v42_v0, 0.0  ;;  %v56_v4 = vsel %vm49_vm0, %v44_v1, 0.0  ;;  %v45_v5 = vld [vmem:[%s5932_s0 + $0x18] sm:$0xff] }
   0x3   :  { %51 = vadd.xlane.f32.xlu0 %v50_v3  ;;  %57 = vadd.xlane.f32.xlu1 %v56_v4 }
   0x4   :  { %17 = vsyncpa [#allocation3], 0  ;;  %v53_v6 = vsel %vm49_vm0, %v43_v2, 0.0  ;;  %v59_v7 = vsel %vm49_vm0, %v45_v5, 0.0  ;;  %v46_v8 = vld [vmem:[%s5933_s1] sm:$0xff]  ;;  %v47_v9 = vld [vmem:[%s5933_s1 + $0x8] sm:$0xff]  ;;  %v103_v62 = vlaneseq }
   0x5   :  { %v119_v10 = vsel %vm49_vm0, %v46_v8, 0.0  ;;  %v122_v11 = vsel %vm49_vm0, %v47_v9, 0.0  ;;  %v157_v42 = vld [vmem:[%s5937_s5] sm:$0xff]  ;;  %v158_v43 = vld [vmem:[%s5937_s5 + $0x8] sm:$0xff]  ;;  %v159_v48 = vld [vmem:[%s5937_s5 + $0x10] sm:$0xff]  ;;  %vm4927_vm1 = vmmov 0  }
   0x6   :  { %v169_v44 = vld [vmem:[%s5937_s5 + $0x60] sm:$0xff]  ;;  %v4634_v45 = vpack.c.bf16 %v158_v43, %v157_v42  ;;  %v170_v46 = vld [vmem:[%s5937_s5 + $0x68] sm:$0xff]  ;;  %v160_v49 = vld [vmem:[%s5937_s5 + $0x18] sm:$0xff]  ;;  %v5088_v4 = vshrl.u32 %v103_v62, 7  ;;  %vm1431_vm2 = vcmask 64512  }
   0x7   :  { %54 = vadd.xlane.f32.xlu0 %v53_v6  ;;  %60 = vadd.xlane.f32.xlu1 %v59_v7  ;;  %v4658_v47 = vpack.c.bf16 %v170_v46, %v169_v44  ;;  %v171_v50 = vld [vmem:[%s5937_s5 + $0x70] sm:$0xff]  ;;  %v4638_v51 = vpack.c.bf16 %v160_v49, %v159_v48  ;;  %v172_v52 = vld [vmem:[%s5937_s5 + $0x78] sm:$0xff]  ;;  %v161_v54 = vld [vmem:[%s5937_s5 + $0x20] sm:$0xff] }
   0x8   :  { %4635 = vmatprep.subr.bf16.mxu0 %v4634_v45  ;;  %v4662_v53 = vpack.c.bf16 %v172_v52, %v171_v50  ;;  %v162_v55 = vld [vmem:[%s5937_s5 + $0x28] sm:$0xff]  ;;  %v177_v56 = vld [vmem:[%s5937_s5 + $0xa0] sm:$0xff]  ;;  %v168_v48 = vld [vmem:[%s5937_s5 + $0x58] sm:$0xff] }
   0x9   :  { %4659 = vmatprep.subr.bf16.mxu1 %v4658_v47  ;;  %4637 = vmatpush3.bf16.msra.mxu0 %v4634_v45  ;;  %v4642_v57 = vpack.c.bf16 %v162_v55, %v161_v54  ;;  %v178_v58 = vld [vmem:[%s5937_s5 + $0xa8] sm:$0xff]  ;;  %v185_v43 = vld [vmem:[%s5937_s5 + $0xe0] sm:$0xff]  ;;  %v187_v49 = vld [vmem:[%s5937_s5 + $0xf0] sm:$0xff] }
   0xa   :  { %4661 = vmatpush3.bf16.msra.mxu1 %v4658_v47  ;;  %4639 = vmatprep.subr.bf16.mxu0 %v4638_v51  ;;  %v4674_v59 = vpack.c.bf16 %v178_v58, %v177_v56  ;;  %v166_v42 = vld [vmem:[%s5937_s5 + $0x48] sm:$0xff]  ;;  %v167_v47 = vld [vmem:[%s5937_s5 + $0x50] sm:$0xff]  ;;  %v188_v50 = vld [vmem:[%s5937_s5 + $0xf8] sm:$0xff] }
   0xb   :  { %120 = vadd.xlane.f32.xlu0 %v119_v10  ;;  %123 = vadd.xlane.f32.xlu1 %v122_v11  ;;  %v5094_v11 = vld [vmem:[%s5942_s10] sm:$0xff]  ;;  %v4694_v54 = vpack.c.bf16 %v188_v50, %v187_v49  ;;  %v174_v56 = vld [vmem:[%s5937_s5 + $0x88] sm:$0xff]  ;;  %v827_v49 = vld [vmem:[%s5938_s6 + $0x50] sm:$0xff] }
   0xc   :  { %4663 = vmatprep.subr.bf16.mxu1 %v4662_v53  ;;  %v173_v55 = vld [vmem:[%s5937_s5 + $0x80] sm:$0xff]  ;;  %v828_v50 = vld [vmem:[%s5938_s6 + $0x58] sm:$0xff] }
   0xd   :  { %4641 = vmatpush3.bf16.msra.mxu0 %v4638_v51  ;;  %v4666_v58 = vpack.c.bf16 %v174_v56, %v173_v55  ;;  %v833_v56 = vld [vmem:[%s5938_s6 + $0x80] sm:$0xff] }
   0xe   :  { %4665 = vmatpush3.bf16.msra.mxu1 %v4662_v53  ;;  %4643 = vmatprep.subr.bf16.mxu0 %v4642_v57  ;;  %v4654_v53 = vpack.c.bf16 %v168_v48, %v167_v47 }
   0xf   :  { %4675 = vmatprep.subr.bf16.mxu1 %v4674_v59 }
  0x90   :  { %v52_v12 = vpop.xlane.xlu0 %51  ;;  %v58_v13 = vpop.xlane.xlu1 %57 }
  0x91   :  { %v63_v14 = vmul.f32 0.03125, %v52_v12  ;;  %v65_v15 = vmul.f32 0.03125, %v58_v13  ;;  %v113_v12 = vsub.s32 1, %v5088_v4 }
  0x93   :  { %v5022_v16 = vsub.f32 %v42_v0, %v63_v14  ;;  %v5024_v17 = vsub.f32 %v44_v1, %v65_v15 }
  0x94   :  { %v55_v18 = vpop.xlane.xlu0 %54  ;;  %v61_v19 = vpop.xlane.xlu1 %60 }
  0x95   :  { %v64_v20 = vmul.f32 0.03125, %v55_v18  ;;  %v66_v21 = vmul.f32 0.03125, %v61_v19  ;;  %v71_v22 = vmul.f32 %v5022_v16, %v5022_v16  ;;  %v73_v23 = vmul.f32 %v5024_v17, %v5024_v17 }
  0x96   :  { %v114_v18 = vrot.slane %v5094_v11, %v113_v12 }
  0x97   :  { %v5030_v24 = vsub.f32 %v43_v2, %v64_v20  ;;  %v5032_v25 = vsub.f32 %v45_v5, %v66_v21  ;;  %v75_v26 = vsel %vm49_vm0, %v71_v22, 0.0  ;;  %v81_v29 = vsel %vm49_vm0, %v73_v23, 0.0 }
  0x98   :  { %76 = vadd.xlane.f32.xlu0 %v75_v26  ;;  %v121_v27 = vpop.xlane.xlu0 %120  ;;  %v124_v28 = vpop.xlane.xlu1 %123 }
  0x99   :  { %v125_v30 = vmul.f32 0.03125, %v121_v27  ;;  %v126_v31 = vmul.f32 0.03125, %v124_v28  ;;  %v72_v32 = vmul.f32 %v5030_v24, %v5030_v24  ;;  %v74_v33 = vmul.f32 %v5032_v25, %v5032_v25 }
  0x9b   :  { %v5040_v34 = vsub.f32 %v46_v8, %v125_v30  ;;  %v5042_v35 = vsub.f32 %v47_v9, %v126_v31  ;;  %v78_v36 = vsel %vm49_vm0, %v72_v32, 0.0  ;;  %v84_v37 = vsel %vm49_vm0, %v74_v33, 0.0  ;;  %v164_v30 = vld [vmem:[%s5937_s5 + $0x38] sm:$0xff]  ;;  %v179_v31 = vld [vmem:[%s5937_s5 + $0xb0] sm:$0xff] }
  0x9c   :  { %82 = vadd.xlane.f32.xlu0 %v81_v29  ;;  %79 = vadd.xlane.f32.xlu1 %v78_v36  ;;  %v105_v9 = vsub.s32 0, %v5088_v4  ;;  %v163_v29 = vld [vmem:[%s5937_s5 + $0x30] sm:$0xff] }
  0x9d   :  { %v129_v38 = vmul.f32 %v5040_v34, %v5040_v34  ;;  %v130_v39 = vmul.f32 %v5042_v35, %v5042_v35 }
  0x9e   :  { %v106_v13 = vrot.slane %v5094_v11, %v105_v9  ;;  %v181_v9 = vld [vmem:[%s5937_s5 + $0xc0] sm:$0xff] }
  0x9f   :  { %v131_v40 = vsel %vm49_vm0, %v129_v38, 0.0  ;;  %v134_v41 = vsel %vm49_vm0, %v130_v39, 0.0  ;;  %v165_v38 = vld [vmem:[%s5937_s5 + $0x40] sm:$0xff] }
  0xa0   :  { %85 = vadd.xlane.f32.xlu1 %v84_v37  ;;  %132 = vadd.xlane.f32.xlu0 %v131_v40  ;;  %v4646_v40 = vpack.c.bf16 %v164_v30, %v163_v29  ;;  %v4650_v44 = vpack.c.bf16 %v166_v42, %v165_v38  ;;  %v832_v29 = vld [vmem:[%s5938_s6 + $0x78] sm:$0xff]  ;;  %v817_v30 = vld [vmem:[%s5938_s6] sm:$0xff] }
  0xa1   :  { %v820_v38 = vld [vmem:[%s5938_s6 + $0x18] sm:$0xff] }
  0xa4   :  { %135 = vadd.xlane.f32.xlu1 %v134_v41 }
 0x125   :  { %v77_v60 = vpop.xlane.xlu0 %76 }
 0x126   :  { %v87_v61 = vmul.f32 0.03125, %v77_v60  ;;  %v822_v60 = vld [vmem:[%s5938_s6 + $0x28] sm:$0xff] }
 0x128   :  { %v91_v63 = vadd.f32 1e-05, %v87_v61  ;;  %v147_v61 = vsub.s32 2, %v5088_v4 }
 0x129   :  { %v80_v0 = vpop.xlane.xlu1 %79  ;;  %v83_v1 = vpop.xlane.xlu0 %82 }
 0x12a   :  { %4805 = vrsqrt.f32 %v91_v63  ;;  %v88_v2 = vmul.f32 0.03125, %v80_v0  ;;  %v89_v3 = vmul.f32 0.03125, %v83_v1  ;;  %v175_v63 = vld [vmem:[%s5937_s5 + $0x90] sm:$0xff]  ;;  %v176_v0 = vld [vmem:[%s5937_s5 + $0x98] sm:$0xff]  ;;  %v5195_v12 = vrot.slane %v5094_v11, %v147_v61 }
 0x12c   :  { %v92_v5 = vadd.f32 1e-05, %v88_v2  ;;  %v93_v6 = vadd.f32 1e-05, %v89_v3  ;;  %v823_v3 = vld [vmem:[%s5938_s6 + $0x30] sm:$0xff] }
 0x12d   :  { %v86_v7 = vpop.xlane.xlu1 %85  ;;  %v133_v19 = vpop.xlane.xlu0 %132 }
 0x12e   :  { %4807 = vrsqrt.f32 %v92_v5  ;;  %v90_v8 = vmul.f32 0.03125, %v86_v7  ;;  %v137_v23 = vmul.f32 0.03125, %v133_v19  ;;  %v4670_v7 = vpack.c.bf16 %v176_v0, %v175_v63  ;;  %v829_v19 = vld [vmem:[%s5938_s6 + $0x60] sm:$0xff]  ;;  %v842_v63 = vld [vmem:[%s5938_s6 + $0xc8] sm:$0xff] }
 0x12f   :  { %4809 = vrsqrt.f32 %v93_v6  ;;  %v4926_v6 = vmov 0.0|0.0  }
 0x130   :  { %v94_v10 = vadd.f32 1e-05, %v90_v8  ;;  %v139_v36 = vadd.f32 1e-05, %v137_v23  ;;  %v824_v8 = vld [vmem:[%s5938_s6 + $0x38] sm:$0xff] }
 0x131   :  { %v136_v52 = vpop.xlane.xlu1 %135 }
 0x132   :  { %4811 = vrsqrt.f32 %v94_v10  ;;  %v182_v10 = vld [vmem:[%s5937_s5 + $0xc8] sm:$0xff] }
 0x133   :  { %4813 = vrsqrt.f32 %v139_v36 }
 0x134   :  { %v4806_v14 = vpop.eup %4805 }
 0x135   :  { %v99_v15 = vmul.f32 %v4806_v14, %v5022_v16  ;;  %v4682_v14 = vpack.c.bf16 %v182_v10, %v181_v9 }
 0x137   :  { %v107_v20 = vmul.f32 %v106_v13, %v99_v15 }
 0x138   :  { %v4808_v21 = vpop.eup %4807 }
 0x139   :  { %v4810_v22 = vpop.eup %4809  ;;  %v115_v26 = vadd.f32 %v114_v18, %v107_v20  ;;  %v100_v27 = vmul.f32 %v4808_v21, %v5030_v24  ;;  %v830_v20 = vld [vmem:[%s5938_s6 + $0x68] sm:$0xff]  ;;  %v4928_v21 = vmov 0.0  }
 0x13a   :  { %v101_v28 = vmul.f32 %v4810_v22, %v5024_v17  ;;  %v180_v17 = vld [vmem:[%s5937_s5 + $0xb8] sm:$0xff]  ;;  %v183_v22 = vld [vmem:[%s5937_s5 + $0xd0] sm:$0xff]  ;;  %v4717_v23 = vpack.c.bf16 %v830_v20, %v829_v19 }
 0x13b   :  { %4294 = vmatprep.mubr.msk.f32.mxu0 %vm49_vm0, %v115_v26  ;;  %4327 = vmatprep.mubr.msk.f32.mxu1 %vm49_vm0, %v115_v26  ;;  %v108_v16 = vmul.f32 %v106_v13, %v100_v27  ;;  %v4678_v41 = vpack.c.bf16 %v180_v17, %v179_v31  ;;  %v818_v31 = vld [vmem:[%s5938_s6 + $0x8] sm:$0xff]  ;;  %v837_v17 = vld [vmem:[%s5938_s6 + $0xa0] sm:$0xff] }
 0x13c   :  { %v4812_v24 = vpop.eup %4811  ;;  %v109_v32 = vmul.f32 %v106_v13, %v101_v28  ;;  %v831_v28 = vld [vmem:[%s5938_s6 + $0x70] sm:$0xff] }
 0x13d   :  { %v102_v33 = vmul.f32 %v4812_v24, %v5032_v25  ;;  %v5117_v37 = vadd.f32 %v114_v18, %v108_v16  ;;  %v186_v25 = vld [vmem:[%s5937_s5 + $0xe8] sm:$0xff]  ;;  %v4814_v62 = vpop.eup %4813  ;;  %v4720_v16 = vpack.c.bf16 %v832_v29, %v831_v28  ;;  %v1418_v28 = vld [vmem:[%s5935_s3 + $0x18] sm:$0xff] }
 0x13e   :  { %v5122_v39 = vadd.f32 %v114_v18, %v109_v32  ;;  %v4690_v46 = vpack.c.bf16 %v186_v25, %v185_v43  ;;  %v143_v5 = vmul.f32 %v4814_v62, %v5040_v34  ;;  %v153_v34 = vsub.s32 3, %v5088_v4  ;;  %v838_v24 = vld [vmem:[%s5938_s6 + $0xa8] sm:$0xff]  ;;  %v825_v43 = vld [vmem:[%s5938_s6 + $0x40] sm:$0xff] }
 0x13f   :  { %4295 = vmatmul.mubr.msk.f32.vlgmr.msra.gmra.mrb[0].mxu0 %vm49_vm0, %v5117_v37  ;;  %4328 = vmatmul.mubr.msk.f32.vlgmr.msra.gmra.mrb[0].mxu1 %vm49_vm0, %v5117_v37  ;;  %v110_v45 = vmul.f32 %v106_v13, %v102_v33  ;;  %v4708_v13 = vpack.c.bf16 %v824_v8, %v823_v3  ;;  %v4699_v33 = vpack.c.bf16 %v818_v31, %v817_v30  ;;  %v826_v25 = vld [vmem:[%s5938_s6 + $0x48] sm:$0xff]  ;;  %v841_v62 = vld [vmem:[%s5938_s6 + $0xc0] sm:$0xff] }
 0x140   :  { %4645 = vmatpush3.bf16.msra.mxu0 %v4642_v57  ;;  %4677 = vmatpush3.bf16.msra.mxu1 %v4674_v59  ;;  %v138_v57 = vmul.f32 0.03125, %v136_v52  ;;  %v821_v59 = vld [vmem:[%s5938_s6 + $0x20] sm:$0xff]  ;;  %v149_v15 = vmul.f32 %v5195_v12, %v143_v5  ;;  %v4729_v36 = vpack.c.bf16 %v838_v24, %v837_v17  ;;  %v4711_v47 = vpack.c.bf16 %v826_v25, %v825_v43  ;;  %v847_v52 = vld [vmem:[%s5938_s6 + $0xf0] sm:$0xff]  ;;  %v196_v24 = vld [vmem:[%s5934_s2 + $0x38] sm:$0xff] }
 0x141   :  { %4305 = vmatprep.mubr.msk.f32.mxu0 %vm49_vm0, %v115_v26  ;;  %4349 = vmatprep.mubr.msk.f32.mxu1 %vm49_vm0, %v5122_v39  ;;  %v5152_v51 = vadd.f32 %v114_v18, %v110_v45  ;;  %v4705_v2 = vpack.c.bf16 %v822_v60, %v821_v59  ;;  %v5207_v18 = vrot.slane %v5094_v11, %v153_v34  ;;  %v184_v11 = vld [vmem:[%s5937_s5 + $0xd8] sm:$0xff]  ;;  %v845_v45 = vld [vmem:[%s5938_s6 + $0xe0] sm:$0xff]  ;;  %v835_v59 = vld [vmem:[%s5938_s6 + $0x90] sm:$0xff]  ;;  %s4929_s5 = smov 120  }
 0x142   :  { %4647 = vmatprep.subr.bf16.mxu0 %v4646_v40  ;;  %4679 = vmatprep.subr.bf16.mxu1 %v4678_v41  ;;  %v140_v1 = vadd.f32 1e-05, %v138_v57  ;;  %v4686_v27 = vpack.c.bf16 %v184_v11, %v183_v22  ;;  %v834_v57 = vld [vmem:[%s5938_s6 + $0x88] sm:$0xff]  ;;  %v836_v60 = vld [vmem:[%s5938_s6 + $0x98] sm:$0xff]  ;;  %v4735_v0 = vpack.c.bf16 %v842_v63, %v841_v62  ;;  %v189_v5 = vld [vmem:[%s5934_s2] sm:$0xff] }
 0x143   :  { %v4726_v61 = vpack.c.bf16 %v836_v60, %v835_v59  ;;  %v190_v43 = vld [vmem:[%s5934_s2 + $0x8] sm:$0xff] }
 0x144   :  { %4649 = vmatpush3.bf16.msra.mxu0 %v4646_v40  ;;  %4681 = vmatpush3.bf16.msra.mxu1 %v4678_v41  ;;  %4815 = vrsqrt.f32 %v140_v1  ;;  %v839_v40 = vld [vmem:[%s5938_s6 + $0xb0] sm:$0xff]  ;;  %v840_v41 = vld [vmem:[%s5938_s6 + $0xb8] sm:$0xff]  ;;  %v194_v62 = vld [vmem:[%s5934_s2 + $0x28] sm:$0xff] }
 0x145   :  { %4651 = vmatprep.subr.bf16.mxu0 %v4650_v44  ;;  %4691 = vmatprep.subr.bf16.mxu1 %v4690_v46  ;;  %v843_v1 = vld [vmem:[%s5938_s6 + $0xd0] sm:$0xff] }
 0x147   :  { %4306 = vmatmul.mubr.msk.f32.vlgmr.msra.gmra.mrb[2].mxu0 %vm49_vm0, %v5117_v37  ;;  %4350 = vmatmul.mubr.msk.f32.vlgmr.msra.gmra.mrb[2].mxu1 %vm49_vm0, %v5152_v51 }
 0x148   :  { %4653 = vmatpush3.bf16.msra.mxu0 %v4650_v44  ;;  %4316 = vmatprep.mubr.msk.f32.mxu0 %vm49_vm0, %v115_v26  ;;  %v5224_v26 = vadd.f32 %v5207_v18, %v149_v15 }
 0x149   :  { %4693 = vmatpush3.bf16.msra.mxu1 %v4690_v46  ;;  %4371 = vmatprep.mubr.msk.f32.mxu1 %vm49_vm0, %v5122_v39  ;;  %v846_v46 = vld [vmem:[%s5938_s6 + $0xe8] sm:$0xff] }
 0x14a   :  { %4655 = vmatprep.subr.bf16.mxu0 %v4654_v53  ;;  %4695 = vmatprep.subr.bf16.mxu1 %v4694_v54  ;;  %v4741_v48 = vpack.c.bf16 %v846_v46, %v845_v45  ;;  %v200_v45 = vld [vmem:[%s5934_s2 + $0x58] sm:$0xff] }
 0x14c   :  { %4657 = vmatpush3.bf16.msra.mxu0 %v4654_v53  ;;  %v848_v53 = vld [vmem:[%s5938_s6 + $0xf8] sm:$0xff] }
 0x14d   :  { %4697 = vmatpush3.bf16.msra.mxu1 %v4694_v54  ;;  %4667 = vmatprep.subr.bf16.mxu0 %v4666_v58  ;;  %v4714_v54 = vpack.c.bf16 %v828_v50, %v827_v49  ;;  %v4744_v55 = vpack.c.bf16 %v848_v53, %v847_v52  ;;  %v192_v50 = vld [vmem:[%s5934_s2 + $0x18] sm:$0xff]  ;;  %v1417_v52 = vld [vmem:[%s5935_s3 + $0x10] sm:$0xff] }
 0x14e   :  { %4704 = vmatprep.subr.bf16.mxu1 %v4926_v6  ;;  %v4816_v32 = vpop.eup %4815 }
 0x14f   :  { %4317 = vmatmul.mubr.msk.f32.vlgmr.msra.gmra.mrb[4].mxu0 %vm49_vm0, %v5117_v37  ;;  %v819_v37 = vld [vmem:[%s5938_s6 + $0x10] sm:$0xff] }
 0x150   :  { %4372 = vmatmul.mubr.msk.f32.vlgmr.msra.gmra.mrb[4].mxu1 %vm49_vm0, %v5152_v51  ;;  %4669 = vmatpush3.bf16.msra.mxu0 %v4666_v58  ;;  %v4702_v42 = vpack.c.bf16 %v820_v38, %v819_v37  ;;  %v4723_v58 = vpack.c.bf16 %v834_v57, %v833_v56  ;;  %v1420_v38 = vld [vmem:[%s5935_s3 + $0x28] sm:$0xff]  ;;  %v193_v56 = vld [vmem:[%s5934_s2 + $0x20] sm:$0xff] }
 0x151   :  { %4338 = vmatprep.mubr.msk.f32.mxu0 %vm49_vm0, %v5122_v39  ;;  %4706 = vmatpush3.bf16.msra.mxu1 %v4705_v2  ;;  %v844_v2 = vld [vmem:[%s5938_s6 + $0xd8] sm:$0xff] }
 0x152   :  { %4671 = vmatprep.subr.bf16.mxu0 %v4670_v7  ;;  %4707 = vmatprep.subr.bf16.mxu1 %v4926_v6  ;;  %v4738_v3 = vpack.c.bf16 %v844_v2, %v843_v1  ;;  %v204_v1 = vld [vmem:[%s5934_s2 + $0x78] sm:$0xff] }
 0x153   :  { %4393 = vmatprep.mubr.msk.f32.mxu1 %vm4927_vm1, %v4928_v21 }
 0x154   :  { %4673 = vmatpush3.bf16.msra.mxu0 %v4670_v7  ;;  %v195_v7 = vld [vmem:[%s5934_s2 + $0x30] sm:$0xff] }
 0x155   :  { %4709 = vmatpush3.bf16.msra.mxu1 %v4708_v13  ;;  %4683 = vmatprep.subr.bf16.mxu0 %v4682_v14 }
 0x156   :  { %4716 = vmatprep.subr.bf16.mxu1 %v4926_v6 }
 0x157   :  { %4339 = vmatmul.mubr.msk.f32.vlgmr.msra.gmra.mrb[6].mxu0 %vm49_vm0, %v5152_v51 }
 0x158   :  { %4394 = vmatmul.mubr.msk.f32.vlgmr.msra.gmra.mrb[6].mxu1 %vm49_vm0, %v5224_v26  ;;  %4685 = vmatpush3.bf16.msra.mxu0 %v4682_v14 }
 0x159   :  { %4360 = vmatprep.mubr.msk.f32.mxu0 %vm49_vm0, %v5122_v39  ;;  %4718 = vmatpush3.bf16.msra.mxu1 %v4717_v23  ;;  %v144_v39 = vmul.f32 %v4816_v32, %v5042_v35  ;;  %v4732_v35 = vpack.c.bf16 %v840_v41, %v839_v40  ;;  %v199_v32 = vld [vmem:[%s5934_s2 + $0x50] sm:$0xff] }
 0x15a   :  { %4687 = vmatprep.subr.bf16.mxu0 %v4686_v27  ;;  %4719 = vmatprep.subr.bf16.mxu1 %v4926_v6 }
 0x15b   :  { %4415 = vmatprep.mubr.msk.f32.mxu1 %vm4927_vm1, %v4928_v21  ;;  %v150_v44 = vmul.f32 %v5195_v12, %v144_v39  ;;  %v1416_v39 = vld [vmem:[%s5935_s3 + $0x8] sm:$0xff] }
 0x15c   :  { %4689 = vmatpush3.bf16.msra.mxu0 %v4686_v27 }
 0x15d   :  { %4721 = vmatpush3.bf16.msra.mxu1 %v4720_v16  ;;  %4698 = vmatprep.subr.bf16.mxu0 %v4926_v6 }
 0x15e   :  { %4728 = vmatprep.subr.bf16.mxu1 %v4926_v6 }
 0x15f   :  { %4361 = vmatmul.mubr.msk.f32.vlgmr.msra.gmra.mrb[8].mxu0 %vm49_vm0, %v5152_v51  ;;  %v156_v51 = vadd.f32 %v5207_v18, %v150_v44 }
 0x160   :  { %4416 = vmatmul.mubr.msk.f32.vlgmr.msra.gmra.mrb[8].mxu1 %vm49_vm0, %v5224_v26  ;;  %4700 = vmatpush3.bf16.msra.mxu0 %v4699_v33 }
 0x161   :  { %4730 = vmatpush3.bf16.msra.mxu1 %v4729_v36  ;;  %4701 = vmatprep.subr.bf16.mxu0 %v4926_v6  ;;  %v1415_v36 = vld [vmem:[%s5935_s3] sm:$0xff] }
 0x162   :  { %4731 = vmatprep.subr.bf16.mxu1 %v4926_v6  ;;  %4382 = vmatprep.mubr.msk.f32.mxu0 %vm4927_vm1, %v4928_v21 }
 0x163   :  { %4437 = vmatprep.mubr.msk.f32.mxu1 %vm4927_vm1, %v4928_v21 }
 0x164   :  { %4703 = vmatpush3.bf16.msra.mxu0 %v4702_v42 }
 0x165   :  { %4733 = vmatpush3.bf16.msra.mxu1 %v4732_v35  ;;  %4710 = vmatprep.subr.bf16.mxu0 %v4926_v6 }
 0x166   :  { %4740 = vmatprep.subr.bf16.mxu1 %v4926_v6 }
 0x167   :  { %4383 = vmatmul.mubr.msk.f32.vlgmr.msra.gmra.mrb[10].mxu0 %vm49_vm0, %v5224_v26 }
 0x168   :  { %4438 = vmatmul.mubr.msk.f32.vlgmr.msra.gmra.mrb[10].mxu1 %vm49_vm0, %v156_v51  ;;  %4712 = vmatpush3.bf16.msra.mxu0 %v4711_v47  ;;  %v191_v47 = vld [vmem:[%s5934_s2 + $0x10] sm:$0xff] }
 0x169   :  { %4742 = vmatpush3.bf16.msra.mxu1 %v4741_v48  ;;  %4713 = vmatprep.subr.bf16.mxu0 %v4926_v6  ;;  %v203_v48 = vld [vmem:[%s5934_s2 + $0x70] sm:$0xff] }
 0x16a   :  { %4743 = vmatprep.subr.bf16.mxu1 %v4926_v6  ;;  %4404 = vmatprep.mubr.msk.f32.mxu0 %vm4927_vm1, %v4928_v21 }
 0x16b   :  { %4459 = vmatprep.mubr.msk.f32.mxu1 %vm4927_vm1, %v4928_v21 }
 0x16c   :  { %4715 = vmatpush3.bf16.msra.mxu0 %v4714_v54 }
 0x16d   :  { %4745 = vmatpush3.bf16.msra.mxu1 %v4744_v55  ;;  %4722 = vmatprep.subr.bf16.mxu0 %v4926_v6  ;;  %v1422_v55 = vld [vmem:[%s5935_s3 + $0x38] sm:$0xff] }
 0x16f   :  { %4405 = vmatmul.mubr.msk.f32.vlgmr.msra.gmra.mrb[12].mxu0 %vm49_vm0, %v5224_v26 }
 0x170   :  { %4460 = vmatmul.mubr.msk.f32.vlgmr.msra.gmra.mrb[12].mxu1 %vm49_vm0, %v156_v51  ;;  %4724 = vmatpush3.bf16.msra.mxu0 %v4723_v58 }
 0x171   :  { %4725 = vmatprep.subr.bf16.mxu0 %v4926_v6  ;;  %4426 = vmatprep.mubr.msk.f32.mxu0 %vm4927_vm1, %v4928_v21 }
 0x174   :  { %4727 = vmatpush3.bf16.msra.mxu0 %v4726_v61 }
 0x175   :  { %4734 = vmatprep.subr.bf16.mxu0 %v4926_v6 }
 0x177   :  { %4427 = vmatmul.mubr.msk.f32.vlgmr.msra.gmra.mrb[14].mxu0 %vm49_vm0, %v156_v51 }
 0x178   :  { %4736 = vmatpush3.bf16.msra.mxu0 %v4735_v0  ;;  %4448 = vmatprep.mubr.msk.f32.mxu0 %vm4927_vm1, %v4928_v21 }
 0x179   :  { %4737 = vmatprep.subr.bf16.mxu0 %v4926_v6 }
 0x17c   :  { %4739 = vmatpush3.bf16.msra.mxu0 %v4738_v3  ;;  %v197_v3 = vld [vmem:[%s5934_s2 + $0x40] sm:$0xff] }
 0x17f   :  { %4449 = vmatmul.mubr.msk.f32.vlgmr.msra.gmra.mrb[16].mxu0 %vm49_vm0, %v156_v51 }
 0x212   :  { %v4296_v8 = vpop.f32.mrb[0].mxu0  ;;  %v4329_v9 = vpop.f32.mrb[0].mxu1 }
 0x213   :  { %v277_v10 = vpop.f32.mrb[1].mxu0  ;;  %v502_v12 = vpop.f32.mrb[1].mxu1  ;;  %v508_v33 = vadd.f32 %v4329_v9, %v196_v24  ;;  %v283_v49 = vadd.f32 %v4296_v8, %v190_v43  ;;  %v1419_v9 = vld [vmem:[%s5935_s3 + $0x20] sm:$0xff] }
 0x214   :  { %v278_v34 = vadd.f32 %v277_v10, %v189_v5  ;;  %v503_v13 = vadd.f32 %v502_v12, %v195_v7 }
 0x216   :  { %4464 = vmatprep.mubr.msk.f32.mxu0 %vm1431_vm2, %v278_v34  ;;  %4479 = vmatprep.mubr.msk.f32.mxu1 %vm1431_vm2, %v503_v13  ;;  %v198_v13 = vld [vmem:[%s5934_s2 + $0x48] sm:$0xff] }
 0x21a   :  { %v4307_v6 = vpop.f32.mrb[2].mxu0  ;;  %v4351_v14 = vpop.f32.mrb[2].mxu1 }
 0x21b   :  { %v352_v15 = vpop.f32.mrb[3].mxu0  ;;  %v658_v18 = vpop.f32.mrb[3].mxu1  ;;  %v664_v51 = vadd.f32 %v4351_v14, %v200_v45  ;;  %v358_v58 = vadd.f32 %v4307_v6, %v192_v50  ;;  %v201_v6 = vld [vmem:[%s5934_s2 + $0x60] sm:$0xff]  ;;  %v2131_v45 = vld [vmem:[%s5936_s4 + $0x58] sm:$0xff] }
 0x21c   :  { %v659_v37 = vadd.f32 %v658_v18, %v199_v32  ;;  %v353_v53 = vadd.f32 %v352_v15, %v191_v47  ;;  %v1421_v18 = vld [vmem:[%s5935_s3 + $0x30] sm:$0xff] }
 0x222   :  { %v5361_v19 = vpop.f32.mrb[4].mxu0 }
 0x223   :  { %v5363_v20 = vpop.f32.mrb[4].mxu1  ;;  %v427_v21 = vpop.f32.mrb[5].mxu0  ;;  %v433_v5 = vadd.f32 %v5361_v19, %v194_v62 }
 0x224   :  { %v808_v22 = vpop.f32.mrb[5].mxu1  ;;  %v428_v2 = vadd.f32 %v427_v21, %v193_v56  ;;  %v814_v7 = vadd.f32 %v5363_v20, %v204_v1 }
 0x225   :  { %v809_v54 = vadd.f32 %v808_v22, %v203_v48  ;;  %v202_v22 = vld [vmem:[%s5934_s2 + $0x68] sm:$0xff]  ;;  %v2130_v48 = vld [vmem:[%s5936_s4 + $0x50] sm:$0xff] }
 0x22a   :  { %v5365_v11 = vpop.f32.mrb[6].mxu0 }
 0x22b   :  { %v5367_v23 = vpop.f32.mrb[6].mxu1  ;;  %v5369_v26 = vpop.f32.mrb[7].mxu0  ;;  %v589_v14 = vadd.f32 %v5365_v11, %v198_v13 }
 0x22c   :  { %v4395_v27 = vpop.f32.mrb[7].mxu1  ;;  %v1424_v46 = vadd.f32 %v1416_v39, %v5367_v23  ;;  %v584_v8 = vadd.f32 %v5369_v26, %v197_v3 }
 0x22d   :  { %v2127_v27 = vld [vmem:[%s5936_s4 + $0x38] sm:$0xff] }
 0x232   :  { %v5374_v29 = vpop.f32.mrb[8].mxu0 }
 0x233   :  { %v5376_v16 = vpop.f32.mrb[8].mxu1  ;;  %v5378_v30 = vpop.f32.mrb[9].mxu0  ;;  %v739_v11 = vadd.f32 %v5374_v29, %v202_v22  ;;  %v2129_v22 = vld [vmem:[%s5936_s4 + $0x48] sm:$0xff] }
 0x234   :  { %v1426_v31 = vadd.f32 %v1418_v28, %v5376_v16  ;;  %v4417_v17 = vpop.f32.mrb[9].mxu1  ;;  %v734_v15 = vadd.f32 %v5378_v30, %v201_v6 }
 0x236   :  { %4477 = vmatprep.subr.msk.mxu1 %vm1431_vm2, %v1426_v31 }
 0x237   :  { %4478 = vmatpush3.xpose.msk.msra.mxu1 %vm1431_vm2, %v1426_v31  ;;  %v2126_v31 = vld [vmem:[%s5936_s4 + $0x30] sm:$0xff] }
 0x23a   :  { %4480 = vmatmul.mubr.msk.f32.vlgmr.msra.gmra.mrb[14].mxu1 %vm1431_vm2, %v508_v33  ;;  %v5399_v40 = vpop.f32.mrb[10].mxu0 }
 0x23b   :  { %v1423_v41 = vadd.f32 %v1415_v36, %v5399_v40  ;;  %v5402_v42 = vpop.f32.mrb[10].mxu1  ;;  %4489 = vmatprep.mubr.msk.f32.mxu1 %vm1431_vm2, %v659_v37  ;;  %v4384_v35 = vpop.f32.mrb[11].mxu0  ;;  %v2121_v37 = vld [vmem:[%s5936_s4 + $0x8] sm:$0xff] }
 0x23c   :  { %v1428_v25 = vadd.f32 %v1420_v38, %v5402_v42  ;;  %v4439_v44 = vpop.f32.mrb[11].mxu1  ;;  %v2120_v35 = vld [vmem:[%s5936_s4] sm:$0xff] }
 0x23d   :  { %4462 = vmatprep.subr.msk.mxu0 %vm1431_vm2, %v1423_v41 }
 0x23e   :  { %4487 = vmatprep.subr.msk.mxu1 %vm1431_vm2, %v1428_v25  ;;  %4463 = vmatpush3.xpose.msk.msra.mxu0 %vm1431_vm2, %v1423_v41 }
 0x23f   :  { %4488 = vmatpush3.xpose.msk.msra.mxu1 %vm1431_vm2, %v1428_v25  ;;  %4467 = vmatprep.subr.msk.mxu0 %vm1431_vm2, %v1424_v46 }
 0x241   :  { %4465 = vmatmul.mubr.msk.f32.vlgmr.msra.gmra.mrb[18].mxu0 %vm1431_vm2, %v283_v49 }
 0x242   :  { %4490 = vmatmul.mubr.msk.f32.vlgmr.msra.gmra.mrb[16].mxu1 %vm1431_vm2, %v664_v51  ;;  %v5438_v57 = vpop.f32.mrb[12].mxu0  ;;  %4468 = vmatpush3.xpose.msk.msra.mxu0 %vm1431_vm2, %v1424_v46 }
 0x243   :  { %v1425_v59 = vadd.f32 %v1417_v52, %v5438_v57  ;;  %v5442_v60 = vpop.f32.mrb[12].mxu1  ;;  %4469 = vmatprep.mubr.msk.f32.mxu0 %vm1431_vm2, %v353_v53  ;;  %4499 = vmatprep.mubr.msk.f32.mxu1 %vm1431_vm2, %v809_v54  ;;  %v4406_v61 = vpop.f32.mrb[13].mxu0 }
 0x244   :  { %v1430_v63 = vadd.f32 %v1422_v55, %v5442_v60  ;;  %v4461_v0 = vpop.f32.mrb[13].mxu1  ;;  %v2125_v61 = vld [vmem:[%s5936_s4 + $0x28] sm:$0xff] }
 0x245   :  { %4470 = vmatmul.mubr.msk.f32.vlgmr.msra.gmra.mrb[20].mxu0 %vm1431_vm2, %v358_v58  ;;  %4472 = vmatprep.subr.msk.mxu0 %vm1431_vm2, %v1425_v59  ;;  %v2123_v58 = vld [vmem:[%s5936_s4 + $0x18] sm:$0xff] }
 0x246   :  { %4497 = vmatprep.subr.msk.mxu1 %vm1431_vm2, %v1430_v63  ;;  %4473 = vmatpush3.xpose.msk.msra.mxu0 %vm1431_vm2, %v1425_v59 }
 0x247   :  { %4474 = vmatprep.mubr.msk.f32.mxu0 %vm1431_vm2, %v428_v2  ;;  %4498 = vmatpush3.xpose.msk.msra.mxu1 %vm1431_vm2, %v1430_v63  ;;  %v2135_v2 = vld [vmem:[%s5936_s4 + $0x78] sm:$0xff] }
 0x249   :  { %4475 = vmatmul.mubr.msk.f32.vlgmr.msra.gmra.mrb[22].mxu0 %vm1431_vm2, %v433_v5 }
 0x24a   :  { %4500 = vmatmul.mubr.msk.f32.vlgmr.msra.gmra.mrb[18].mxu1 %vm1431_vm2, %v814_v7  ;;  %v5470_v10 = vpop.f32.mrb[14].mxu0  ;;  %4484 = vmatprep.mubr.msk.f32.mxu0 %vm1431_vm2, %v584_v8 }
 0x24b   :  { %v1427_v12 = vadd.f32 %v1419_v9, %v5470_v10  ;;  %v4428_v34 = vpop.f32.mrb[15].mxu0 }
 0x24c   :  { %v2122_v34 = vld [vmem:[%s5936_s4 + $0x10] sm:$0xff] }
 0x24d   :  { %4482 = vmatprep.subr.msk.mxu0 %vm1431_vm2, %v1427_v12 }
 0x24e   :  { %4483 = vmatpush3.xpose.msk.msra.mxu0 %vm1431_vm2, %v1427_v12 }
 0x251   :  { %4485 = vmatmul.mubr.msk.f32.vlgmr.msra.gmra.mrb[24].mxu0 %vm1431_vm2, %v589_v14 }
 0x252   :  { %v5488_v19 = vpop.f32.mrb[16].mxu0  ;;  %4494 = vmatprep.mubr.msk.f32.mxu0 %vm1431_vm2, %v734_v15 }
 0x253   :  { %v1429_v20 = vadd.f32 %v1421_v18, %v5488_v19  ;;  %v4450_v21 = vpop.f32.mrb[17].mxu0 }
 0x255   :  { %4492 = vmatprep.subr.msk.mxu0 %vm1431_vm2, %v1429_v20 }
 0x256   :  { %4493 = vmatpush3.xpose.msk.msra.mxu0 %vm1431_vm2, %v1429_v20  ;;  %v2124_v20 = vld [vmem:[%s5936_s4 + $0x20] sm:$0xff] }
 0x259   :  { %4495 = vmatmul.mubr.msk.f32.vlgmr.msra.gmra.mrb[26].mxu0 %vm1431_vm2, %v739_v11 }
 0x30d   :  { %v4481_v26 = vpop.f32.mrb[14].mxu1 }
 0x30e   :  { %v2111_v28 = vmul.f32 0.35355338, %v4481_v26  ;;  %v1759_v30 = vpop.f32.mrb[15].mxu1 }
 0x30f   :  { %v2110_v17 = vmul.f32 0.35355338, %v1759_v30 }
 0x310   :  { %v5505_v24 = vadd.f32 %v2127_v27, %v2111_v28 }
 0x311   :  { %v5507_v32 = vadd.f32 %v2126_v31, %v2110_v17 }
 0x312   :  { %v2173_v29 = vsel %vm1431_vm2, %v5505_v24, -inf }
 0x313   :  { %2174 = vmax.xlane.f32.xlu1 %v2173_v29  ;;  %v2170_v33 = vsel %vm1431_vm2, %v5507_v32, -inf  ;;  %v2128_v29 = vld [vmem:[%s5936_s4 + $0x40] sm:$0xff] }
 0x314   :  { %2171 = vmax.xlane.f32.xlu0 %v2170_v33  ;;  %v4466_v36 = vpop.f32.mrb[18].mxu0 }
 0x315   :  { %v2105_v38 = vmul.f32 0.35355338, %v4466_v36  ;;  %v4491_v39 = vpop.f32.mrb[16].mxu1  ;;  %v1507_v41 = vpop.f32.mrb[19].mxu0  ;;  %v2134_v36 = vld [vmem:[%s5936_s4 + $0x70] sm:$0xff] }
 0x316   :  { %v2115_v43 = vmul.f32 0.35355338, %v4491_v39  ;;  %v2104_v25 = vmul.f32 0.35355338, %v1507_v41  ;;  %v1927_v44 = vpop.f32.mrb[17].mxu1 }
 0x317   :  { %v2114_v46 = vmul.f32 0.35355338, %v1927_v44  ;;  %v5522_v47 = vadd.f32 %v2121_v37, %v2105_v38 }
 0x318   :  { %v4471_v49 = vpop.f32.mrb[20].mxu0  ;;  %v5527_v50 = vadd.f32 %v2120_v35, %v2104_v25  ;;  %v5531_v53 = vadd.f32 %v2131_v45, %v2115_v43  ;;  %v2133_v43 = vld [vmem:[%s5936_s4 + $0x68] sm:$0xff] }
 0x319   :  { %v1591_v51 = vpop.f32.mrb[21].mxu0  ;;  %v2155_v52 = vsel %vm1431_vm2, %v5522_v47, -inf  ;;  %v2107_v54 = vmul.f32 0.35355338, %v4471_v49  ;;  %v5535_v56 = vadd.f32 %v2130_v48, %v2114_v46  ;;  %v2132_v46 = vld [vmem:[%s5936_s4 + $0x60] sm:$0xff] }
 0x31a   :  { %2156 = vmax.xlane.f32.xlu1 %v2155_v52  ;;  %v2152_v55 = vsel %vm1431_vm2, %v5527_v50, -inf  ;;  %v2185_v1 = vsel %vm1431_vm2, %v5531_v53, -inf  ;;  %v2106_v3 = vmul.f32 0.35355338, %v1591_v51 }
 0x31b   :  { %2153 = vmax.xlane.f32.xlu0 %v2152_v55  ;;  %v2182_v8 = vsel %vm1431_vm2, %v5535_v56, -inf  ;;  %v5550_v9 = vadd.f32 %v2123_v58, %v2107_v54 }
 0x31c   :  { %v4476_v59 = vpop.f32.mrb[22].mxu0  ;;  %v5563_v18 = vadd.f32 %v2122_v34, %v2106_v3 }
 0x31d   :  { %v2109_v62 = vmul.f32 0.35355338, %v4476_v59  ;;  %v4501_v63 = vpop.f32.mrb[18].mxu1  ;;  %v1675_v0 = vpop.f32.mrb[23].mxu0  ;;  %v2161_v15 = vsel %vm1431_vm2, %v5550_v9, -inf }
 0x31e   :  { %v2119_v5 = vmul.f32 0.35355338, %v4501_v63  ;;  %v2095_v7 = vpop.f32.mrb[19].mxu1  ;;  %2186 = vmax.xlane.f32.xlu1 %v2185_v1  ;;  %v2108_v14 = vmul.f32 0.35355338, %v1675_v0  ;;  %v2158_v31 = vsel %vm1431_vm2, %v5563_v18, -inf }
 0x31f   :  { %2183 = vmax.xlane.f32.xlu0 %v2182_v8  ;;  %v5552_v12 = vadd.f32 %v2125_v61, %v2109_v62  ;;  %v2118_v28 = vmul.f32 0.35355338, %v2095_v7 }
 0x320   :  { %v5559_v6 = vadd.f32 %v2135_v2, %v2119_v5  ;;  %v5575_v17 = vadd.f32 %v2124_v20, %v2108_v14 }
 0x321   :  { %v2167_v13 = vsel %vm1431_vm2, %v5552_v12, -inf  ;;  %v5591_v41 = vadd.f32 %v2134_v36, %v2118_v28 }
 0x322   :  { %2168 = vmax.xlane.f32.xlu1 %v2167_v13  ;;  %v2197_v27 = vsel %vm1431_vm2, %v5559_v6, -inf  ;;  %v2164_v39 = vsel %vm1431_vm2, %v5575_v17, -inf }
 0x323   :  { %2162 = vmax.xlane.f32.xlu0 %v2161_v15  ;;  %v2194_v49 = vsel %vm1431_vm2, %v5591_v41, -inf }
 0x324   :  { %v4486_v21 = vpop.f32.mrb[24].mxu0 }
 0x325   :  { %v2113_v11 = vmul.f32 0.35355338, %v4486_v21  ;;  %v1843_v26 = vpop.f32.mrb[25].mxu0 }
 0x326   :  { %v2112_v30 = vmul.f32 0.35355338, %v1843_v26  ;;  %2198 = vmax.xlane.f32.xlu1 %v2197_v27 }
 0x327   :  { %2159 = vmax.xlane.f32.xlu0 %v2158_v31  ;;  %v5580_v33 = vadd.f32 %v2129_v22, %v2113_v11 }
 0x328   :  { %v5587_v38 = vadd.f32 %v2128_v29, %v2112_v30 }
 0x329   :  { %v2179_v37 = vsel %vm1431_vm2, %v5580_v33, -inf }
 0x32a   :  { %2180 = vmax.xlane.f32.xlu1 %v2179_v37  ;;  %v2176_v45 = vsel %vm1431_vm2, %v5587_v38, -inf }
 0x32b   :  { %2165 = vmax.xlane.f32.xlu0 %v2164_v39 }
 0x32c   :  { %v4496_v35 = vpop.f32.mrb[26].mxu0 }
 0x32d   :  { %v2117_v25 = vmul.f32 0.35355338, %v4496_v35  ;;  %v2011_v44 = vpop.f32.mrb[27].mxu0 }
 0x32e   :  { %v2116_v48 = vmul.f32 0.35355338, %v2011_v44  ;;  %2177 = vmax.xlane.f32.xlu1 %v2176_v45 }
 0x32f   :  { %2195 = vmax.xlane.f32.xlu0 %v2194_v49  ;;  %v5603_v51 = vadd.f32 %v2133_v43, %v2117_v25 }
 0x330   :  { %v5605_v52 = vadd.f32 %v2132_v46, %v2116_v48 }
 0x331   :  { %v2191_v54 = vsel %vm1431_vm2, %v5603_v51, -inf }
 0x332   :  { %2192 = vmax.xlane.f32.xlu1 %v2191_v54  ;;  %v2188_v55 = vsel %vm1431_vm2, %v5605_v52, -inf }
 0x333   :  { %2189 = vmax.xlane.f32.xlu0 %v2188_v55 }
 0x343   :  { %2499 = vrot.lane.b32.xlu1 %v5438_v57, %s4929_s5 }
 0x349   :  { %2329 = vrot.lane.b32.xlu0 %v5399_v40, %s4929_s5 }
 0x3a0   :  { %v2175_v58 = vpop.xlane.xlu1 %2174 }
 0x3a1   :  { %v2207_v59 = vsub.f32 %v5505_v24, %v2175_v58  ;;  %v2172_v61 = vpop.xlane.xlu0 %2171 }
 0x3a2   :  { %v2206_v62 = vsub.f32 %v5507_v32, %v2172_v61 }
 0x3a3   :  { %v2230_v63 = vmul.f32 1.442695, %v2207_v59 }
 0x3a4   :  { %v2228_v0 = vmul.f32 1.442695, %v2206_v62 }
 0x3a5   :  { %4817 = vpow2.f32 %v2230_v63 }
 0x3a6   :  { %4819 = vpow2.f32 %v2228_v0 }
 0x3a7   :  { %v2157_v1 = vpop.xlane.xlu1 %2156 }
 0x3a8   :  { %v2201_v2 = vsub.f32 %v5522_v47, %v2157_v1  ;;  %v2154_v3 = vpop.xlane.xlu0 %2153 }
 0x3a9   :  { %v2200_v5 = vsub.f32 %v5527_v50, %v2154_v3 }
 0x3aa   :  { %v2218_v57 = vmul.f32 1.442695, %v2201_v2 }
 0x3ab   :  { %v2216_v7 = vmul.f32 1.442695, %v2200_v5  ;;  %v2187_v8 = vpop.xlane.xlu1 %2186 }
 0x3ac   :  { %4821 = vpow2.f32 %v2218_v57  ;;  %v2211_v40 = vsub.f32 %v5531_v53, %v2187_v8  ;;  %v2184_v24 = vpop.xlane.xlu0 %2183 }
 0x3ad   :  { %4823 = vpow2.f32 %v2216_v7  ;;  %v2210_v32 = vsub.f32 %v5535_v56, %v2184_v24 }
 0x3ae   :  { %v2238_v34 = vmul.f32 1.442695, %v2211_v40 }
 0x3af   :  { %v5621_v13 = vpop.eup %4817  ;;  %v2236_v14 = vmul.f32 1.442695, %v2210_v32  ;;  %v2169_v15 = vpop.xlane.xlu1 %2168 }
 0x3b0   :  { %v5623_v20 = vpop.eup %4819  ;;  %4825 = vpow2.f32 %v2238_v34  ;;  %v2205_v47 = vsub.f32 %v5552_v12, %v2169_v15  ;;  %v2163_v50 = vpop.xlane.xlu0 %2162  ;;  %v2269_v21 = vsel %vm1431_vm2, %v5621_v13, 0.0 }
 0x3b1   :  { %4827 = vpow2.f32 %v2236_v14  ;;  %v2203_v53 = vsub.f32 %v5550_v9, %v2163_v50  ;;  %2270 = vadd.xlane.f32.xlu1 %v2269_v21  ;;  %v2266_v56 = vsel %vm1431_vm2, %v5623_v20, 0.0 }
 0x3b2   :  { %v2226_v22 = vmul.f32 1.442695, %v2205_v47  ;;  %2267 = vadd.xlane.f32.xlu0 %v2266_v56 }
 0x3b3   :  { %v2222_v11 = vmul.f32 1.442695, %v2203_v53  ;;  %v2199_v26 = vpop.xlane.xlu1 %2198 }
 0x3b4   :  { %4829 = vpow2.f32 %v2226_v22  ;;  %v2215_v27 = vsub.f32 %v5559_v6, %v2199_v26  ;;  %v2160_v28 = vpop.xlane.xlu0 %2159 }
 0x3b5   :  { %4831 = vpow2.f32 %v2222_v11  ;;  %v2202_v12 = vsub.f32 %v5563_v18, %v2160_v28 }
 0x3b6   :  { %v5633_v30 = vpop.eup %4821  ;;  %v2246_v9 = vmul.f32 1.442695, %v2215_v27 }
 0x3b7   :  { %v5635_v31 = vpop.eup %4823  ;;  %v2220_v29 = vmul.f32 1.442695, %v2202_v12  ;;  %v2181_v36 = vpop.xlane.xlu1 %2180  ;;  %v2251_v37 = vsel %vm1431_vm2, %v5633_v30, 0.0 }
 0x3b8   :  { %v2166_v39 = vpop.xlane.xlu0 %2165  ;;  %2252 = vadd.xlane.f32.xlu1 %v2251_v37  ;;  %v2248_v35 = vsel %vm1431_vm2, %v5635_v31, 0.0  ;;  %v2209_v7 = vsub.f32 %v5580_v33, %v2181_v36 }
 0x3b9   :  { %4833 = vpow2.f32 %v2220_v29  ;;  %v2204_v6 = vsub.f32 %v5575_v17, %v2166_v39  ;;  %2249 = vadd.xlane.f32.xlu0 %v2248_v35 }
 0x3ba   :  { %v5642_v18 = vpop.eup %4825  ;;  %4835 = vpow2.f32 %v2246_v9  ;;  %v2234_v40 = vmul.f32 1.442695, %v2209_v7 }
 0x3bb   :  { %v5644_v43 = vpop.eup %4827  ;;  %v2224_v25 = vmul.f32 1.442695, %v2204_v6  ;;  %v2178_v44 = vpop.xlane.xlu1 %2177  ;;  %v2281_v45 = vsel %vm1431_vm2, %v5642_v18, 0.0 }
 0x3bc   :  { %v2196_v46 = vpop.xlane.xlu0 %2195  ;;  %2282 = vadd.xlane.f32.xlu1 %v2281_v45  ;;  %v2278_v48 = vsel %vm1431_vm2, %v5644_v43, 0.0  ;;  %v2208_v24 = vsub.f32 %v5587_v38, %v2178_v44 }
 0x3bd   :  { %2279 = vadd.xlane.f32.xlu0 %v2278_v48  ;;  %4837 = vpow2.f32 %v2224_v25  ;;  %v2214_v57 = vsub.f32 %v5591_v41, %v2196_v46 }
 0x3be   :  { %v5650_v49 = vpop.eup %4829  ;;  %v2232_v34 = vmul.f32 1.442695, %v2208_v24 }
 0x3bf   :  { %v5652_v17 = vpop.eup %4831  ;;  %v2263_v54 = vsel %vm1431_vm2, %v5650_v49, 0.0  ;;  %v2193_v55 = vpop.xlane.xlu1 %2192  ;;  %v2244_v8 = vmul.f32 1.442695, %v2214_v57 }
 0x3c0   :  { %2264 = vadd.xlane.f32.xlu1 %v2263_v54  ;;  %v2190_v58 = vpop.xlane.xlu0 %2189  ;;  %v2257_v59 = vsel %vm1431_vm2, %v5652_v17, 0.0  ;;  %v2213_v47 = vsub.f32 %v5603_v51, %v2193_v55 }
 0x3c1   :  { %2258 = vadd.xlane.f32.xlu0 %v2257_v59  ;;  %4839 = vpow2.f32 %v2244_v8  ;;  %v2212_v32 = vsub.f32 %v5605_v52, %v2190_v58 }
 0x3c2   :  { %4841 = vpow2.f32 %v2234_v40  ;;  %v2242_v50 = vmul.f32 1.442695, %v2213_v47 }
 0x3c3   :  { %v5658_v61 = vpop.eup %4833  ;;  %v5664_v1 = vpop.permute.xlu1 %2499  ;;  %4843 = vpow2.f32 %v2232_v34 }
 0x3c4   :  { %v2330_v62 = vpop.permute.xlu0 %2329  ;;  %v2254_v63 = vsel %vm1431_vm2, %v5658_v61, 0.0  ;;  %v5662_v0 = vpop.eup %4835 }
 0x3c5   :  { %2255 = vadd.xlane.f32.xlu0 %v2254_v63  ;;  %4502 = vmatprep.subr.mxu0 %v2330_v62  ;;  %v2293_v2 = vsel %vm1431_vm2, %v5662_v0, 0.0 }
 0x3c6   :  { %4503 = vmatpush3.msra.mxu0 %v2330_v62 }
 0x3c7   :  { %4512 = vmatprep.subr.mxu0 %v5664_v1  ;;  %v5669_v3 = vpop.eup %4837 }
 0x3c8   :  { %v2260_v5 = vsel %vm1431_vm2, %v5669_v3, 0.0 }
 0x3c9   :  { %2294 = vadd.xlane.f32.xlu0 %v2293_v2 }
 0x3cd   :  { %2261 = vadd.xlane.f32.xlu0 %v2260_v5 }
 0x3d1   :  { %2669 = vrot.lane.b32.xlu1 %v5470_v10, %s4929_s5  ;;  %v2240_v10 = vmul.f32 1.442695, %v2212_v32 }
 0x3d3   :  { %4845 = vpow2.f32 %v2240_v10 }
 0x3d4   :  { %4847 = vpow2.f32 %v2242_v50  ;;  %v3010_v50 = vld [vmem:[%s5939_s7 + $0x10] sm:$0xff] }
 0x3d5   :  { %2584 = vrot.lane.b32.xlu1 %v5376_v16, %s4929_s5  ;;  %v5683_v16 = vpop.eup %4839 }
 0x3d6   :  { %v2290_v41 = vsel %vm1431_vm2, %v5683_v16, 0.0 }
 0x3e3   :  { %2414 = vrot.lane.b32.xlu0 %v5367_v23, %s4929_s5  ;;  %v5687_v23 = vpop.eup %4841 }
 0x3e4   :  { %v2275_v33 = vsel %vm1431_vm2, %v5687_v23, 0.0  ;;  %v5691_v38 = vpop.eup %4843 }
 0x3e5   :  { %v5693_v52 = vpop.eup %4845  ;;  %v2272_v14 = vsel %vm1431_vm2, %v5691_v38, 0.0 }
 0x3e6   :  { %v2284_v15 = vsel %vm1431_vm2, %v5693_v52, 0.0  ;;  %v5704_v21 = vpop.eup %4847 }
 0x3e7   :  { %v2287_v53 = vsel %vm1431_vm2, %v5704_v21, 0.0 }
 0x3f9   :  { %2291 = vadd.xlane.f32.xlu1 %v2290_v41 }
 0x3fd   :  { %2276 = vadd.xlane.f32.xlu1 %v2275_v33 }
 0x401   :  { %2273 = vadd.xlane.f32.xlu1 %v2272_v14  ;;  %v3012_v14 = vld [vmem:[%s5939_s7 + $0x20] sm:$0xff] }
 0x402   :  { %2285 = vadd.xlane.f32.xlu0 %v2284_v15 }
 0x412   :  { %2754 = vrot.lane.b32.xlu1 %v5402_v42, %s4929_s5 }
 0x418   :  { %2839 = vrot.lane.b32.xlu0 %v5488_v19, %s4929_s5 }
 0x436   :  { %2288 = vadd.xlane.f32.xlu1 %v2287_v53 }
 0x43e   :  { %v2271_v56 = vpop.xlane.xlu1 %2270 }
 0x43f   :  { %v2268_v22 = vpop.xlane.xlu0 %2267 }
 0x445   :  { %v2253_v11 = vpop.xlane.xlu1 %2252 }
 0x446   :  { %4849 = vrcp.f32 %v2253_v11  ;;  %v2250_v26 = vpop.xlane.xlu0 %2249 }
 0x447   :  { %4851 = vrcp.f32 %v2250_v26  ;;  %2924 = vrot.lane.b32.xlu1 %v5442_v60, %s4929_s5 }
 0x448   :  { %4853 = vrcp.f32 %v2268_v22 }
 0x449   :  { %v2283_v42 = vpop.xlane.xlu1 %2282 }
 0x44a   :  { %v2280_v19 = vpop.xlane.xlu0 %2279 }
 0x44d   :  { %v2265_v28 = vpop.xlane.xlu1 %2264 }
 0x44e   :  { %v2259_v51 = vpop.xlane.xlu0 %2258 }
 0x44f   :  { %4855 = vrcp.f32 %v2259_v51 }
 0x450   :  { %v4850_v27 = vpop.eup %4849 }
 0x451   :  { %v4852_v12 = vpop.eup %4851  ;;  %v2313_v36 = vmul.f32 %v4850_v27, %v5633_v30  ;;  %v2670_v60 = vpop.permute.xlu1 %2669 }
 0x452   :  { %v2256_v9 = vpop.xlane.xlu0 %2255  ;;  %v2312_v29 = vmul.f32 %v4852_v12, %v5635_v31  ;;  %v4854_v35 = vpop.eup %4853  ;;  %v3014_v12 = vld [vmem:[%s5939_s7 + $0x30] sm:$0xff] }
 0x453   :  { %4857 = vrcp.f32 %v2256_v9  ;;  %v2318_v48 = vmul.f32 %v4854_v35, %v5623_v20  ;;  %v3015_v9 = vld [vmem:[%s5939_s7 + $0x38] sm:$0xff]  ;;  %v5790_v35 = vld [vmem:[%s5942_s10] sm:$0xff] }
 0x454   :  { %4504 = vmatprep.mubr.msk.f32.mxu0 %vm1431_vm2, %v2312_v29  ;;  %4859 = vrcp.f32 %v2271_v56  ;;  %v3011_v56 = vld [vmem:[%s5939_s7 + $0x18] sm:$0xff] }
 0x455   :  { %4505 = vmatmul.mubr.msk.f32.vlgmr.msra.gmra.mrb[28].mxu0 %vm1431_vm2, %v2313_v36  ;;  %4861 = vrcp.f32 %v2280_v19  ;;  %v2585_v46 = vpop.permute.xlu1 %2584 }
 0x456   :  { %4513 = vmatpush3.msra.mxu0 %v5664_v1  ;;  %v5715_v37 = vpop.xlane.xlu0 %2294  ;;  %4863 = vrcp.f32 %v2265_v28 }
 0x457   :  { %4522 = vmatprep.subr.mxu0 %v2670_v60 }
 0x459   :  { %v4856_v31 = vpop.eup %4855 }
 0x45a   :  { %v2262_v39 = vpop.xlane.xlu0 %2261  ;;  %v2315_v44 = vmul.f32 %v4856_v31, %v5652_v17 }
 0x45b   :  { %4865 = vrcp.f32 %v2262_v39  ;;  %v3682_v39 = vsub.s32 6, %v5088_v4 }
 0x45c   :  { %4867 = vrcp.f32 %v2283_v42 }
 0x45d   :  { %v4858_v6 = vpop.eup %4857  ;;  %v3683_v31 = vrot.slane %v5790_v35, %v3682_v39 }
 0x45e   :  { %v2415_v30 = vpop.permute.xlu0 %2414  ;;  %v2314_v25 = vmul.f32 %v4858_v6, %v5658_v61  ;;  %v4860_v45 = vpop.eup %4859 }
 0x45f   :  { %4507 = vmatprep.subr.mxu1 %v2415_v30  ;;  %v4862_v54 = vpop.eup %4861  ;;  %v2319_v55 = vmul.f32 %v4860_v45, %v5621_v13  ;;  %v4899_v45 = vld [vmem:[%s5932_s0] sm:$0xff] }
 0x460   :  { %4508 = vmatpush3.msra.mxu1 %v2415_v30  ;;  %4509 = vmatprep.mubr.msk.f32.mxu1 %vm1431_vm2, %v2314_v25  ;;  %v4864_v58 = vpop.eup %4863  ;;  %v2322_v17 = vmul.f32 %v4862_v54, %v5644_v43  ;;  %v4898_v30 = vld [vmem:[%s5932_s0 + $0x8] sm:$0xff] }
 0x461   :  { %4510 = vmatmul.mubr.msk.f32.vlgmr.msra.gmra.mrb[20].mxu1 %vm1431_vm2, %v2315_v44  ;;  %4517 = vmatprep.subr.mxu1 %v2585_v46  ;;  %v2317_v20 = vmul.f32 %v4864_v58, %v5650_v49 }
 0x462   :  { %4518 = vmatpush3.msra.mxu1 %v2585_v46  ;;  %4519 = vmatprep.mubr.msk.f32.mxu1 %vm1431_vm2, %v2318_v48 }
 0x465   :  { %v4866_v59 = vpop.eup %4865  ;;  %4520 = vmatmul.mubr.msk.f32.vlgmr.msra.gmra.mrb[22].mxu1 %vm1431_vm2, %v2319_v55 }
 0x466   :  { %4529 = vmatprep.mubr.msk.f32.mxu1 %vm1431_vm2, %v2322_v17  ;;  %v2316_v61 = vmul.f32 %v4866_v59, %v5669_v3  ;;  %v4868_v1 = vpop.eup %4867 }
 0x467   :  { %v2323_v3 = vmul.f32 %v4868_v1, %v5642_v18  ;;  %v3008_v18 = vld [vmem:[%s5939_s7] sm:$0xff] }
 0x468   :  { %4514 = vmatprep.mubr.msk.f32.mxu0 %vm1431_vm2, %v2316_v61  ;;  %v4900_v61 = vld [vmem:[%s5932_s0 + $0x18] sm:$0xff] }
 0x469   :  { %4515 = vmatmul.mubr.msk.f32.vlgmr.msra.gmra.mrb[30].mxu0 %vm1431_vm2, %v2317_v20 }
 0x46a   :  { %4523 = vmatpush3.msra.mxu0 %v2670_v60 }
 0x486   :  { %v2292_v62 = vpop.xlane.xlu1 %2291 }
 0x487   :  { %4869 = vrcp.f32 %v2292_v62  ;;  %v4901_v62 = vld [vmem:[%s5932_s0 + $0x10] sm:$0xff] }
 0x48a   :  { %v2277_v13 = vpop.xlane.xlu1 %2276 }
 0x48b   :  { %4871 = vrcp.f32 %v2277_v13 }
 0x48e   :  { %v2274_v43 = vpop.xlane.xlu1 %2273 }
 0x48f   :  { %4873 = vrcp.f32 %v2274_v43  ;;  %v2286_v63 = vpop.xlane.xlu0 %2285 }
 0x490   :  { %4875 = vrcp.f32 %v2286_v63 }
 0x491   :  { %v4870_v2 = vpop.eup %4869  ;;  %4877 = vrcp.f32 %v5715_v37 }
 0x492   :  { %v2755_v5 = vpop.permute.xlu1 %2754  ;;  %v2326_v57 = vmul.f32 %v4870_v2, %v5683_v16 }
 0x493   :  { %4527 = vmatprep.subr.mxu1 %v2755_v5  ;;  %v2840_v49 = vpop.permute.xlu0 %2839 }
 0x494   :  { %4528 = vmatpush3.msra.mxu1 %v2755_v5  ;;  %4532 = vmatprep.subr.mxu0 %v2840_v49 }
 0x495   :  { %4530 = vmatmul.mubr.msk.f32.vlgmr.msra.gmra.mrb[24].mxu1 %vm1431_vm2, %v2323_v3  ;;  %v4872_v7 = vpop.eup %4871 }
 0x496   :  { %4539 = vmatprep.mubr.msk.f32.mxu1 %vm1431_vm2, %v2326_v57  ;;  %v2321_v32 = vmul.f32 %v4872_v7, %v5687_v23 }
 0x499   :  { %v4874_v8 = vpop.eup %4873 }
 0x49a   :  { %v4876_v40 = vpop.eup %4875  ;;  %v2320_v24 = vmul.f32 %v4874_v8, %v5691_v38 }
 0x49b   :  { %v2324_v34 = vmul.f32 %v4876_v40, %v5693_v52  ;;  %v4878_v16 = vpop.eup %4877  ;;  %v3009_v52 = vld [vmem:[%s5939_s7 + $0x8] sm:$0xff] }
 0x49c   :  { %4524 = vmatprep.mubr.msk.f32.mxu0 %vm1431_vm2, %v2320_v24  ;;  %v2327_v23 = vmul.f32 %v4878_v16, %v5662_v0  ;;  %v3013_v0 = vld [vmem:[%s5939_s7 + $0x28] sm:$0xff] }
 0x49d   :  { %4525 = vmatmul.mubr.msk.f32.vlgmr.msra.gmra.mrb[32].mxu0 %vm1431_vm2, %v2321_v32 }
 0x49e   :  { %4533 = vmatpush3.msra.mxu0 %v2840_v49  ;;  %4534 = vmatprep.mubr.msk.f32.mxu0 %vm1431_vm2, %v2324_v34 }
 0x49f   :  { %4542 = vmatprep.subr.mxu0 %v3008_v18 }
 0x4c3   :  { %v2289_v10 = vpop.xlane.xlu1 %2288 }
 0x4c4   :  { %4879 = vrcp.f32 %v2289_v10  ;;  %v3757_v10 = vld [vmem:[%s5940_s8 + $0x8] sm:$0xff] }
 0x4c7   :  { %v2925_v41 = vpop.permute.xlu1 %2924 }
 0x4c8   :  { %4537 = vmatprep.subr.mxu1 %v2925_v41 }
 0x4c9   :  { %4538 = vmatpush3.msra.mxu1 %v2925_v41  ;;  %v3758_v41 = vld [vmem:[%s5940_s8 + $0x10] sm:$0xff] }
 0x4ca   :  { %4540 = vmatmul.mubr.msk.f32.vlgmr.msra.gmra.mrb[26].mxu1 %vm1431_vm2, %v2327_v23  ;;  %4562 = vmatprep.subr.mxu1 %v3012_v14  ;;  %v3759_v23 = vld [vmem:[%s5940_s8 + $0x18] sm:$0xff] }
 0x4cb   :  { %4563 = vmatpush3.msra.mxu1 %v3012_v14 }
 0x4cc   :  { %4567 = vmatprep.subr.mxu1 %v3013_v0 }
 0x4ce   :  { %v4880_v33 = vpop.eup %4879 }
 0x4cf   :  { %v2325_v38 = vmul.f32 %v4880_v33, %v5704_v21  ;;  %v4750_v33 = vpack.c.bf16 %v3759_v23, %v3758_v41 }
 0x4d1   :  { %4535 = vmatmul.mubr.msk.f32.vlgmr.msra.gmra.mrb[34].mxu0 %vm1431_vm2, %v2325_v38 }
 0x4d2   :  { %4543 = vmatpush3.msra.mxu0 %v3008_v18  ;;  %v3756_v18 = vld [vmem:[%s5940_s8] sm:$0xff] }
 0x4d3   :  { %4547 = vmatprep.subr.mxu0 %v3009_v52  ;;  %v4746_v16 = vpack.c.bf16 %v3757_v10, %v3756_v18  ;;  %v3896_v18 = vld [vmem:[%s5941_s9 + $0x60] sm:$0xff]  ;;  %v3897_v10 = vld [vmem:[%s5941_s9 + $0x68] sm:$0xff] }
 0x4d4   :  { %v4778_v41 = vpack.c.bf16 %v3897_v10, %v3896_v18 }
 0x528   :  { %v4506_v15 = vpop.f32.mrb[28].mxu0 }
 0x529   :  { %v2404_v47 = vpop.f32.mrb[29].mxu0 }
 0x52a   :  { %4544 = vmatprep.mubr.msk.f32.mxu0 %vm1431_vm2, %v2404_v47 }
 0x52b   :  { %4545 = vmatmul.mubr.msk.f32.vlgmr.msra.gmra.mrb[36].mxu0 %vm1431_vm2, %v4506_v15 }
 0x52c   :  { %4548 = vmatpush3.msra.mxu0 %v3009_v52 }
 0x52d   :  { %4552 = vmatprep.subr.mxu0 %v3010_v50 }
 0x534   :  { %v4511_v21 = vpop.f32.mrb[20].mxu1 }
 0x535   :  { %v2489_v53 = vpop.f32.mrb[21].mxu1 }
 0x536   :  { %4549 = vmatprep.mubr.msk.f32.mxu0 %vm1431_vm2, %v2489_v53 }
 0x537   :  { %4550 = vmatmul.mubr.msk.f32.vlgmr.msra.gmra.mrb[36].mxu0 %vm1431_vm2, %v4511_v21 }
 0x538   :  { %v4521_v22 = vpop.f32.mrb[22].mxu1  ;;  %4553 = vmatpush3.msra.mxu0 %v3010_v50 }
 0x539   :  { %v2659_v11 = vpop.f32.mrb[23].mxu1  ;;  %4557 = vmatprep.subr.mxu0 %v3011_v56 }
 0x53c   :  { %v4516_v26 = vpop.f32.mrb[30].mxu0 }
 0x53d   :  { %v2574_v42 = vpop.f32.mrb[31].mxu0 }
 0x53e   :  { %4554 = vmatprep.mubr.msk.f32.mxu0 %vm1431_vm2, %v2574_v42 }
 0x53f   :  { %4555 = vmatmul.mubr.msk.f32.vlgmr.msra.gmra.mrb[36].mxu0 %vm1431_vm2, %v4516_v26 }
 0x540   :  { %4559 = vmatprep.mubr.msk.f32.mxu0 %vm1431_vm2, %v2659_v11  ;;  %4558 = vmatpush3.msra.mxu0 %v3011_v56 }
 0x541   :  { %4747 = vmatprep.subr.bf16.mxu0 %v4746_v16 }
 0x547   :  { %4560 = vmatmul.mubr.msk.f32.vlgmr.msra.gmra.mrb[36].mxu0 %vm1431_vm2, %v4521_v22 }
 0x548   :  { %4749 = vmatpush3.bf16.msra.mxu0 %v4746_v16 }
 0x549   :  { %4751 = vmatprep.subr.bf16.mxu0 %v4750_v33 }
 0x54c   :  { %4753 = vmatpush3.bf16.msra.mxu0 %v4750_v33 }
 0x568   :  { %v4531_v19 = vpop.f32.mrb[24].mxu1 }
 0x569   :  { %v2829_v51 = vpop.f32.mrb[25].mxu1 }
 0x570   :  { %v4526_v27 = vpop.f32.mrb[32].mxu0 }
 0x571   :  { %v2744_v28 = vpop.f32.mrb[33].mxu0 }
 0x572   :  { %4564 = vmatprep.mubr.msk.f32.mxu1 %vm1431_vm2, %v2744_v28  ;;  %v3886_v28 = vld [vmem:[%s5941_s9 + $0x10] sm:$0xff] }
 0x573   :  { %4565 = vmatmul.mubr.msk.f32.vlgmr.msra.gmra.mrb[28].mxu1 %vm1431_vm2, %v4526_v27  ;;  %v3885_v27 = vld [vmem:[%s5941_s9 + $0x8] sm:$0xff] }
 0x574   :  { %4569 = vmatprep.mubr.msk.f32.mxu1 %vm1431_vm2, %v2829_v51  ;;  %4568 = vmatpush3.msra.mxu1 %v3013_v0  ;;  %v3884_v51 = vld [vmem:[%s5941_s9] sm:$0xff] }
 0x575   :  { %4572 = vmatprep.subr.mxu1 %v3014_v12 }
 0x57b   :  { %4570 = vmatmul.mubr.msk.f32.vlgmr.msra.gmra.mrb[28].mxu1 %vm1431_vm2, %v4531_v19 }
 0x57c   :  { %4573 = vmatpush3.msra.mxu1 %v3014_v12 }
 0x57d   :  { %4577 = vmatprep.subr.mxu1 %v3015_v9 }
 0x59d   :  { %v4541_v29 = vpop.f32.mrb[26].mxu1 }
 0x59e   :  { %v2999_v36 = vpop.f32.mrb[27].mxu1 }
 0x5a4   :  { %v4536_v60 = vpop.f32.mrb[34].mxu0 }
 0x5a5   :  { %v2914_v37 = vpop.f32.mrb[35].mxu0 }
 0x5a6   :  { %4574 = vmatprep.mubr.msk.f32.mxu1 %vm1431_vm2, %v2914_v37  ;;  %v3889_v37 = vld [vmem:[%s5941_s9 + $0x28] sm:$0xff] }
 0x5a7   :  { %4575 = vmatmul.mubr.msk.f32.vlgmr.msra.gmra.mrb[28].mxu1 %vm1431_vm2, %v4536_v60  ;;  %v3888_v60 = vld [vmem:[%s5941_s9 + $0x20] sm:$0xff] }
 0x5a8   :  { %4578 = vmatpush3.msra.mxu1 %v3015_v9  ;;  %4579 = vmatprep.mubr.msk.f32.mxu1 %vm1431_vm2, %v2999_v36  ;;  %v4754_v9 = vpack.c.bf16 %v3885_v27, %v3884_v51  ;;  %v4762_v39 = vpack.c.bf16 %v3889_v37, %v3888_v60 }
 0x5aa   :  { %4755 = vmatprep.subr.bf16.mxu1 %v4754_v9 }
 0x5af   :  { %4580 = vmatmul.mubr.msk.f32.vlgmr.msra.gmra.mrb[28].mxu1 %vm1431_vm2, %v4541_v29  ;;  %v3887_v29 = vld [vmem:[%s5941_s9 + $0x18] sm:$0xff] }
 0x5b0   :  { %v4758_v36 = vpack.c.bf16 %v3887_v29, %v3886_v28  ;;  %4757 = vmatpush3.bf16.msra.mxu1 %v4754_v9 }
 0x5b2   :  { %4759 = vmatprep.subr.bf16.mxu1 %v4758_v36 }
 0x5b4   :  { %4761 = vmatpush3.bf16.msra.mxu1 %v4758_v36 }
 0x5b5   :  { %4763 = vmatprep.subr.bf16.mxu1 %v4762_v39 }
 0x5b8   :  { %4765 = vmatpush3.bf16.msra.mxu1 %v4762_v39 }
 0x61a   :  { %v4561_v6 = vpop.f32.mrb[36].mxu0 }
 0x61b   :  { %v3677_v25 = vadd.f32 %v4898_v30, %v4561_v6  ;;  %v3331_v44 = vpop.f32.mrb[37].mxu0  ;;  %v3750_v6 = vsub.s32 5, %v5088_v4 }
 0x61c   :  { %v3676_v46 = vadd.f32 %v4899_v45, %v3331_v44 }
 0x61d   :  { %v5799_v48 = vadd.f32 %v3683_v31, %v3677_v25 }
 0x61e   :  { %v5801_v54 = vadd.f32 %v3683_v31, %v3676_v46 }
 0x61f   :  { %v3691_v55 = vsel %vm49_vm0, %v5799_v48, 0.0 }
 0x620   :  { %3692 = vadd.xlane.f32.xlu1 %v3691_v55  ;;  %v3688_v58 = vsel %vm49_vm0, %v5801_v54, 0.0  ;;  %v3751_v55 = vrot.slane %v5790_v35, %v3750_v6 }
 0x621   :  { %3689 = vadd.xlane.f32.xlu0 %v3688_v58 }
 0x682   :  { %v4581_v17 = vpop.f32.mrb[28].mxu1 }
 0x683   :  { %v3655_v59 = vpop.f32.mrb[29].mxu1  ;;  %v3679_v20 = vadd.f32 %v4900_v61, %v4581_v17 }
 0x684   :  { %v3678_v13 = vadd.f32 %v4901_v62, %v3655_v59 }
 0x685   :  { %v5815_v63 = vadd.f32 %v3683_v31, %v3679_v20 }
 0x686   :  { %v5813_v43 = vadd.f32 %v3683_v31, %v3678_v13  ;;  %v3742_v31 = vsub.s32 4, %v5088_v4  ;;  %v3890_v13 = vld [vmem:[%s5941_s9 + $0x30] sm:$0xff] }
 0x687   :  { %v3697_v2 = vsel %vm49_vm0, %v5815_v63, 0.0 }
 0x688   :  { %v3694_v1 = vsel %vm49_vm0, %v5813_v43, 0.0  ;;  %v3743_v30 = vrot.slane %v5790_v35, %v3742_v31 }
 0x689   :  { %3695 = vadd.xlane.f32.xlu0 %v3694_v1  ;;  %v3891_v1 = vld [vmem:[%s5941_s9 + $0x38] sm:$0xff] }
 0x68d   :  { %3698 = vadd.xlane.f32.xlu0 %v3697_v2 }
 0x6ad   :  { %v3693_v5 = vpop.xlane.xlu1 %3692 }
 0x6ae   :  { %v3701_v3 = vmul.f32 0.03125, %v3693_v5  ;;  %v3690_v49 = vpop.xlane.xlu0 %3689  ;;  %v4766_v5 = vpack.c.bf16 %v3891_v1, %v3890_v13 }
 0x6af   :  { %v3700_v57 = vmul.f32 0.03125, %v3690_v49 }
 0x6b0   :  { %v3705_v7 = vsub.f32 %v5799_v48, %v3701_v3  ;;  %4767 = vmatprep.subr.bf16.mxu1 %v4766_v5 }
 0x6b1   :  { %v3704_v8 = vsub.f32 %v5801_v54, %v3700_v57  ;;  %4769 = vmatpush3.bf16.msra.mxu1 %v4766_v5  ;;  %v3892_v57 = vld [vmem:[%s5941_s9 + $0x40] sm:$0xff] }
 0x6b2   :  { %v3709_v40 = vmul.f32 %v3705_v7, %v3705_v7 }
 0x6b3   :  { %v3708_v24 = vmul.f32 %v3704_v8, %v3704_v8 }
 0x6b4   :  { %v3715_v32 = vsel %vm49_vm0, %v3709_v40, 0.0 }
 0x6b5   :  { %3716 = vadd.xlane.f32.xlu1 %v3715_v32  ;;  %v3712_v34 = vsel %vm49_vm0, %v3708_v24, 0.0  ;;  %v3894_v24 = vld [vmem:[%s5941_s9 + $0x50] sm:$0xff]  ;;  %v3895_v32 = vld [vmem:[%s5941_s9 + $0x58] sm:$0xff] }
 0x6b6   :  { %3713 = vadd.xlane.f32.xlu0 %v3712_v34  ;;  %v4774_v34 = vpack.c.bf16 %v3895_v32, %v3894_v24 }
 0x716   :  { %v3696_v38 = vpop.xlane.xlu0 %3695 }
 0x717   :  { %v3702_v52 = vmul.f32 0.03125, %v3696_v38  ;;  %v3898_v38 = vld [vmem:[%s5941_s9 + $0x70] sm:$0xff] }
 0x719   :  { %v5838_v14 = vsub.f32 %v5813_v43, %v3702_v52  ;;  %v3899_v52 = vld [vmem:[%s5941_s9 + $0x78] sm:$0xff] }
 0x71a   :  { %v3699_v0 = vpop.xlane.xlu0 %3698 }
 0x71b   :  { %v3703_v15 = vmul.f32 0.03125, %v3699_v0  ;;  %v3710_v47 = vmul.f32 %v5838_v14, %v5838_v14 }
 0x71d   :  { %v5843_v50 = vsub.f32 %v5815_v63, %v3703_v15  ;;  %v3718_v21 = vsel %vm49_vm0, %v3710_v47, 0.0  ;;  %v4782_v15 = vpack.c.bf16 %v3899_v52, %v3898_v38 }
 0x71e   :  { %3719 = vadd.xlane.f32.xlu0 %v3718_v21 }
 0x71f   :  { %v3711_v53 = vmul.f32 %v5843_v50, %v5843_v50 }
 0x721   :  { %v3721_v56 = vsel %vm49_vm0, %v3711_v53, 0.0 }
 0x722   :  { %3722 = vadd.xlane.f32.xlu1 %v3721_v56  ;;  %v4093_v56 = vld [vmem:[%s5943_s11] ss:$0 sm:$0xff] }
 0x742   :  { %v3717_v22 = vpop.xlane.xlu1 %3716 }
 0x743   :  { %v3725_v11 = vmul.f32 0.03125, %v3717_v22  ;;  %v3714_v26 = vpop.xlane.xlu0 %3713 }
 0x744   :  { %v3724_v42 = vmul.f32 0.03125, %v3714_v26 }
 0x745   :  { %v3729_v19 = vadd.f32 1e-05, %v3725_v11 }
 0x746   :  { %v3728_v12 = vadd.f32 1e-05, %v3724_v42 }
 0x747   :  { %4881 = vrsqrt.f32 %v3729_v19 }
 0x748   :  { %4883 = vrsqrt.f32 %v3728_v12 }
 0x751   :  { %v4882_v25 = vpop.eup %4881 }
 0x752   :  { %v4884_v44 = vpop.eup %4883  ;;  %v3737_v45 = vmul.f32 %v4882_v25, %v3705_v7  ;;  %v3893_v7 = vld [vmem:[%s5941_s9 + $0x48] sm:$0xff]  ;;  %s4930_s9 = smov [#allocation2]  }
 0x753   :  { %v3736_v46 = vmul.f32 %v4884_v44, %v3704_v8  ;;  %v4770_v40 = vpack.c.bf16 %v3893_v7, %v3892_v57  ;;  %s4002_s11 = sshll.u32 %s4930_s9, 4  ;;  %s4003_s11 = int_to_ptr.vmem [resolvable:$true] %s4002_s11 }
 0x754   :  { %v3745_v58 = vmul.f32 %v3743_v30, %v3737_v45  ;;  %s4902_s6 = scalar_lea.vmem %s4003_s11, 512  ;;  %p4907_p1 = scmp.lt.s32.totalorder %s4003_s11, %s4003_s11 }
 0x755   :  { %v3744_v17 = vmul.f32 %v3743_v30, %v3736_v46  ;;  %4771 = vmatprep.subr.bf16.mxu1 %v4770_v40  ;;  %p4903_p0 = scmp.ne.s32.totalorder %s4003_s11, %s4902_s6  ;;  %p4908_p2 = scmp.lt.s32.totalorder %s4902_s6, %s4902_s6 }
 0x756   :  { %v3753_v61 = vadd.f32 %v3751_v55, %v3745_v58  ;;  %4773 = vmatpush3.bf16.msra.mxu1 %v4770_v40 }
 0x757   :  { %v3752_v59 = vadd.f32 %v3751_v55, %v3744_v17  ;;  %4775 = vmatprep.subr.bf16.mxu1 %v4774_v34  ;;  %p4909_p3 = por %p4908_p2, %p4907_p1 }
 0x759   :  { %4590 = vmatprep.mubr.msk.f32.mxu0 %vm49_vm0, %v3752_v59  ;;  %p4910_p4 = pnand %p4909_p3, %p4903_p0 }
 0x75a   :  { %4591 = vmatmul.mubr.msk.f32.vlgmr.msra.gmra.mrb[38].mxu0 %vm49_vm0, %v3753_v61  ;;  %4777 = vmatpush3.bf16.msra.mxu1 %v4774_v34 }
 0x75b   :  { %4779 = vmatprep.subr.bf16.mxu1 %v4778_v41 }
 0x75e   :  { %4781 = vmatpush3.bf16.msra.mxu1 %v4778_v41 }
 0x75f   :  { %4783 = vmatprep.subr.bf16.mxu1 %v4782_v15 }
 0x762   :  { %4785 = vmatpush3.bf16.msra.mxu1 %v4782_v15 }
 0x7ab   :  { %v3720_v20 = vpop.xlane.xlu0 %3719 }
 0x7ac   :  { %v3726_v62 = vmul.f32 0.03125, %v3720_v20  ;;  %v3902_v20 = vsub.s32 7, %v5088_v4 }
 0x7ae   :  { %v3730_v2 = vadd.f32 1e-05, %v3726_v62  ;;  %v3903_v62 = vrot.slane %v5790_v35, %v3902_v20 }
 0x7af   :  { %v3723_v3 = vpop.xlane.xlu1 %3722 }
 0x7b0   :  { %4885 = vrsqrt.f32 %v3730_v2  ;;  %v3727_v49 = vmul.f32 0.03125, %v3723_v3 }
 0x7b2   :  { %v3731_v8 = vadd.f32 1e-05, %v3727_v49 }
 0x7b4   :  { %4887 = vrsqrt.f32 %v3731_v8 }
 0x7ba   :  { %v4886_v16 = vpop.eup %4885 }
 0x7bb   :  { %v3738_v23 = vmul.f32 %v4886_v16, %v5838_v14 }
 0x7bd   :  { %v3746_v33 = vmul.f32 %v3743_v30, %v3738_v23 }
 0x7be   :  { %v4888_v0 = vpop.eup %4887 }
 0x7bf   :  { %v3754_v47 = vadd.f32 %v3751_v55, %v3746_v33  ;;  %v3739_v21 = vmul.f32 %v4888_v0, %v5843_v50 }
 0x7c1   :  { %4593 = vmatprep.mubr.msk.f32.mxu0 %vm49_vm0, %v3754_v47  ;;  %v3747_v14 = vmul.f32 %v3743_v30, %v3739_v21 }
 0x7c3   :  { %v3755_v53 = vadd.f32 %v3751_v55, %v3747_v14 }
 0x7c5   :  { %4594 = vmatmul.mubr.msk.f32.gmra.mrb[40].mxu0 %vm49_vm0, %v3755_v53 }
 0x82d   :  { %v4592_v22 = vpop.f32.mrb[38].mxu0 }
 0x82e   :  { %v3851_v11 = vadd.f32 %v4592_v22, %v4093_v56  ;;  %v3845_v26 = vpop.f32.mrb[39].mxu0 }
 0x82f   :  { %v3846_v42 = vadd.f32 %v4093_v56, %v3845_v26 }
 0x830   :  { %v3869_v19 = vmul.f32 0.70710677, %v3851_v11  ;;  %v3865_v29 = vmul.f32 0.5, %v3851_v11 }
 0x831   :  { %v3868_v51 = vmul.f32 0.70710677, %v3846_v42  ;;  %v3864_v12 = vmul.f32 0.5, %v3846_v42 }
 0x832   :  { %4889 = verf.f32 %v3869_v19 }
 0x833   :  { %4891 = verf.f32 %v3868_v51 }
 0x83c   :  { %v4890_v50 = vpop.eup %4889 }
 0x83d   :  { %v4892_v27 = vpop.eup %4891  ;;  %v3877_v28 = vadd.f32 1.0, %v4890_v50 }
 0x83e   :  { %v3876_v9 = vadd.f32 1.0, %v4892_v27 }
 0x83f   :  { %v3881_v60 = vmul.f32 %v3877_v28, %v3865_v29 }
 0x840   :  { %v3880_v36 = vmul.f32 %v3876_v9, %v3864_v12 }
 0x842   :  { %4628 = vmatprep.mubr.f32.mxu1 %v3880_v36 }
 0x843   :  { %4629 = vmatmul.mubr.f32.vlgmr.msra.gmra.mrb[30].mxu1 %v3881_v60 }
 0x898   :  { %v4595_v37 = vpop.f32.mrb[40].mxu0 }
 0x899   :  { %v3861_v39 = vadd.f32 %v4595_v37, %v4093_v56  ;;  %v3855_v31 = vpop.f32.mrb[41].mxu0 }
 0x89a   :  { %v3856_v6 = vadd.f32 %v4093_v56, %v3855_v31 }
 0x89b   :  { %v3871_v30 = vmul.f32 0.70710677, %v3861_v39  ;;  %v3867_v17 = vmul.f32 0.5, %v3861_v39 }
 0x89c   :  { %v3870_v25 = vmul.f32 0.70710677, %v3856_v6  ;;  %v3866_v55 = vmul.f32 0.5, %v3856_v6 }
 0x89d   :  { %4893 = verf.f32 %v3871_v30 }
 0x89e   :  { %4895 = verf.f32 %v3870_v25 }
 0x8a7   :  { %v4894_v44 = vpop.eup %4893 }
 0x8a8   :  { %v4896_v45 = vpop.eup %4895  ;;  %v3879_v46 = vadd.f32 1.0, %v4894_v44 }
 0x8a9   :  { %v3878_v58 = vadd.f32 1.0, %v4896_v45 }
 0x8aa   :  { %v3883_v61 = vmul.f32 %v3879_v46, %v3867_v17 }
 0x8ab   :  { %v3882_v59 = vmul.f32 %v3878_v58, %v3866_v55 }
 0x8ad   :  { %4631 = vmatprep.mubr.f32.mxu1 %v3882_v59 }
 0x8ae   :  { %4632 = vmatmul.mubr.f32.gmra.mrb[32].mxu1 %v3883_v61 }
 0x916   :  { %v4630_v13 = vpop.f32.mrb[30].mxu1 }
 0x917   :  { %v3976_v1 = vadd.f32 %v4630_v13, %v3903_v62  ;;  %v3970_v2 = vpop.f32.mrb[31].mxu1 }
 0x918   :  { %v3971_v5 = vadd.f32 %v3970_v2, %v3903_v62 }
 0x919   :  { %v3990_v3 = vadd.f32 %v3976_v1, %v5799_v48 }
 0x91a   :  { %v3989_v49 = vadd.f32 %v3971_v5, %v5801_v54 }
 0x91b   :  { %3994 = vst.msk [vmem:[#allocation2 + $0x8] sm:$0xff] %vm49_vm0, %v3990_v3 }
 0x91c   :  { %3993 = vst.msk [vmem:[#allocation2] sm:$0xff] %vm49_vm0, %v3989_v49 }
 0x981   :  { %v4633_v57 = vpop.f32.mrb[32].mxu1 }
 0x982   :  { %v3986_v7 = vadd.f32 %v4633_v57, %v3903_v62  ;;  %v3980_v8 = vpop.f32.mrb[33].mxu1 }
 0x983   :  { %v3981_v4 = vadd.f32 %v3980_v8, %v3903_v62 }
 0x984   :  { %v3992_v35 = vadd.f32 %v3986_v7, %v5815_v63 }
 0x985   :  { %v3991_v40 = vadd.f32 %v3981_v4, %v5813_v43 }
 0x986   :  { %3996 = vst.msk [vmem:[#allocation2 + $0x18] sm:$0xff] %vm49_vm0, %v3992_v35 }
 0x987   :  { %3995 = vst.msk [vmem:[#allocation2 + $0x10] sm:$0xff] %vm49_vm0, %v3991_v40 }
 0x988   :  { %4913 = shalt.err (!%p4910_p4)
}
 0x989   :  { %s4914_s14 = scalar_lea.hbm %s5944_s12, 512 }
 0x98a   :  { %p4915_p5 = scmp.ne.s32.totalorder %s5944_s12, %s4914_s14  ;;  %p4918_p6 = scmp.lt.u32.totalorder %s4914_s14, %s5944_s12 }
 0x98c   :  { %p4920_p7 = pnand %p4918_p6, %p4915_p5 }
 0x98e   :  { %4923 = shalt.err (!%p4920_p7)
}
 0x98f   :  { %s4931_s16 = smov 128   ;;  %s4932_s17 = smov 8  }
 0x990   :  { %4008 = dma.vmem_to_hbm [thread:$0]  %s4003_s11, 512, %s5944_s12, [#allocation3], %s4931_s16, %s4931_s16, %s4932_s17  }
 0x991   :  { %4924 = dma.done.wait [#allocation3], 512  }
 0x992   :  { %4925 = vsyncadd [#allocation3], 4294966784 }
 0x993   :  { %4012 = vsyncpa [#allocation3], 1 }

</bundles_post_ra>
